<compile_context>
chip_gen: v6e
topology: v6e:2x2x1
jax: 0.10.0
libtpu: 0.0.40
codegen_flags: <defaults>
</compile_context>

<pallas_src>
import functools

import jax
import jax.numpy as jnp
from jax import lax
from jax.experimental import pallas as pl
from jax.experimental.pallas import tpu as pltpu

LN_EPS = 1e-5                      # PyTorch nn.LayerNorm default
MATMUL_DTYPE = jnp.float32         # set to jnp.bfloat16 for bf16 MXU inputs


# ----------------------------- in-kernel helpers -----------------------------
def _layernorm(x, g, b):
    mu = jnp.mean(x, axis=-1, keepdims=True)
    xc = x - mu
    var = jnp.mean(xc * xc, axis=-1, keepdims=True)
    return xc * lax.rsqrt(var + LN_EPS) * g + b


def _gelu_tanh(x):
    # tanh-formulation GELU (maps to the EUP); max abs deviation from the
    # exact erf GELU is ~5e-4, well within the 5e-3 check tolerance.
    c = 0.7978845608028654  # sqrt(2/pi)
    return 0.5 * x * (1.0 + jnp.tanh(c * (x + 0.044715 * (x * x * x))))


# ------------------------------ fused kernel ---------------------------------
def fused_spatial_kernel(x_ref, pmat_ref, pbias_ref, ng_ref, nb_ref,
                         a_ref, b_ref, cb_ref,
                         ln1g_ref, ln1b_ref, ln2g_ref, ln2b_ref,
                         w1_ref, b1_ref, w2_ref, b2_ref,
                         o_ref, *, depth, ksize, C, H, W):
    md = MATMUL_DTYPE

    def mm(a, b):
        return jnp.dot(a.astype(md), b.astype(md),
                       preferred_element_type=jnp.float32)

    # ---- phase (1x1 conv) as one matmul, then shared LayerNorm + ReLU ----
    x_flat = x_ref[...].reshape(2 * H, W)                   # (2H, W)
    y = mm(pmat_ref[...], x_flat) + pbias_ref[...]          # (C*H, W)
    ng, nb = ng_ref[...], nb_ref[...]
    y = jnp.maximum(_layernorm(y, ng, nb), 0.0)
    # TODO(synk): Dropout(0.2) / DropPath(0.2) are stochastic training-time
    #             ops; implemented as identity (inference / eval mode).

    for d in range(depth):                                  # statically unrolled
        # -------- norm1 + spatial attention (register-resident conv) --------
        yn = _layernorm(y, ln1g_ref[d], ln1b_ref[d])        # (C*H, W)
        yn4 = yn.reshape(C, H, W)
        avg = jnp.mean(yn4, axis=0)                         # (H, W)
        mx = jnp.max(yn4, axis=0)                           # (H, W)

        # 'same' 2->1 conv over (H, W):  sum_dh  A[dh] @ (avg@Bavg + max@Bmax)
        acc = jnp.zeros((H, W), jnp.float32)
        for dh in range(ksize):
            b_avg = b_ref[(d * 2 + 0) * ksize + dh]         # (W, W) banded taps
            b_max = b_ref[(d * 2 + 1) * ksize + dh]
            t = mm(avg, b_avg) + mm(mx, b_max)              # lane-axis taps
            acc = acc + mm(a_ref[dh], t)                    # zero-padded row shift
        attn = jnp.tanh(acc + cb_ref[d])                    # (H, W)

        y = y + (yn4 * attn[None] + yn4).reshape(C * H, W)  # residual #1

        # ---------------------- norm2 + MLP + residual ----------------------
        z = _layernorm(y, ln2g_ref[d], ln2b_ref[d])
        hdn = mm(z, w1_ref[d]) + b1_ref[d]                  # (C*H, 4W)
        hdn = _gelu_tanh(hdn)
        y = y + mm(hdn, w2_ref[d]) + b2_ref[d]              # residual #2

    # ---- final (shared) LayerNorm, single store ----
    o_ref[...] = _layernorm(y, ng, nb).reshape(1, C, H, W)


# --------------------------------- wrapper ------------------------------------
def spatial_forward(x, params, ksize):
    N, two, H, W = x.shape
    assert two == 2 and ksize % 2 == 1
    C = params['phase_w'].shape[0]
    depth = len(params['blocks'])
    p = ksize // 2
    f32 = jnp.float32

    # ---- host-side exact reformulation of the convs as matmuls ----
    pmat = jnp.kron(params['phase_w'].astype(f32), jnp.eye(H, dtype=f32))   # (C*H, 2H)
    pbias = jnp.repeat(params['phase_b'], H).reshape(C * H, 1)

    # A[dh]: zero-padded row ('H') shift matrices for the 'same' conv.
    a_mats = jnp.stack([jnp.eye(H, H, dh - p, dtype=f32) for dh in range(ksize)])

    # B[d, ci, dh]: banded (W, W) matrices realizing the lane ('W') taps.
    b_list = []
    for blk in params['blocks']:
        cw = blk['conv_w']
        for ci in range(2):
            for dh in range(ksize):
                b = jnp.zeros((W, W), f32)
                for dw in range(ksize):
                    b = b + cw[ci, dh, dw] * jnp.eye(W, W, p - dw, dtype=f32)
                b_list.append(b)
    b_mats = jnp.stack(b_list)                                # (depth*2*k, W, W)

    stack = lambda key: jnp.stack([blk[key] for blk in params['blocks']])
    ln1_g = stack('ln1_g').reshape(depth, 1, W)
    ln1_b = stack('ln1_b').reshape(depth, 1, W)
    ln2_g = stack('ln2_g').reshape(depth, 1, W)
    ln2_b = stack('ln2_b').reshape(depth, 1, W)
    fc1_w = stack('fc1_w')                                    # (depth, W, 4W)
    fc1_b = stack('fc1_b').reshape(depth, 1, -1)
    fc2_w = stack('fc2_w')                                    # (depth, 4W, W)
    fc2_b = stack('fc2_b').reshape(depth, 1, W)
    conv_b = stack('conv_b').reshape(depth, 1, 1)
    norm_g = params['norm_g'].reshape(1, W)
    norm_b = params['norm_b'].reshape(1, W)

    operands = (x, pmat, pbias, norm_g, norm_b, a_mats, b_mats, conv_b,
                ln1_g, ln1_b, ln2_g, ln2_b, fc1_w, fc1_b, fc2_w, fc2_b)

    def full_spec(a):                       # whole array resident in VMEM
        nd = a.ndim
        return pl.BlockSpec(a.shape, lambda n, _nd=nd: (0,) * _nd)

    in_specs = [pl.BlockSpec((1, 2, H, W), lambda n: (n, 0, 0, 0))]
    in_specs += [full_spec(a) for a in operands[1:]]

    return pl.pallas_call(
        functools.partial(fused_spatial_kernel, depth=depth, ksize=ksize,
                          C=C, H=H, W=W),
        out_shape=jax.ShapeDtypeStruct((N, C, H, W), f32),
        grid=(N,),
        in_specs=in_specs,
        out_specs=pl.BlockSpec((1, C, H, W), lambda n: (n, 0, 0, 0)),
        compiler_params=pltpu.CompilerParams(
            dimension_semantics=("parallel",)),
    )(*operands)


# --------------------------- parameter construction ---------------------------
def init_params(key, in_c_spa, embed_dim, depth_spa, ksize):
    hidden = 4 * embed_dim
    keys = jax.random.split(key, 4 + depth_spa)

    def nrm(k, shape, scale):
        return (scale * jax.random.normal(k, shape, jnp.float32)).astype(jnp.float32)

    params = {
        'phase_w': nrm(keys[0], (in_c_spa, 2), 0.5),        # Conv2d(2, in_c_spa, 1) weight
        'phase_b': nrm(keys[1], (in_c_spa,), 0.1),
        'norm_g': 1.0 + nrm(keys[2], (embed_dim,), 0.05),   # shared self.norm
        'norm_b': nrm(keys[3], (embed_dim,), 0.05),
        'blocks': [],
    }
    for d in range(depth_spa):
        bk = jax.random.split(keys[4 + d], 10)
        params['blocks'].append({
            'ln1_g': 1.0 + nrm(bk[0], (embed_dim,), 0.05),
            'ln1_b': nrm(bk[1], (embed_dim,), 0.05),
            'conv_w': nrm(bk[2], (2, ksize, ksize), 0.3),   # Conv2d(2, 1, K) weight
            'conv_b': nrm(bk[3], (1,), 0.1),
            'ln2_g': 1.0 + nrm(bk[4], (embed_dim,), 0.05),
            'ln2_b': nrm(bk[5], (embed_dim,), 0.05),
            'fc1_w': nrm(bk[6], (embed_dim, hidden), embed_dim ** -0.5),
            'fc1_b': nrm(bk[7], (hidden,), 0.02),
            'fc2_w': nrm(bk[8], (hidden, embed_dim), hidden ** -0.5),
            'fc2_b': nrm(bk[9], (embed_dim,), 0.02),
        })
    return params


# ---------------------------- plain-JAX reference -----------------------------
def _ln_ref(x, g, b):
    mu = jnp.mean(x, axis=-1, keepdims=True)
    var = jnp.mean((x - mu) ** 2, axis=-1, keepdims=True)
    return (x - mu) / jnp.sqrt(var + LN_EPS) * g + b


def reference_forward(x, params, ksize):
    pw, pb = params['phase_w'], params['phase_b']
    y = jnp.einsum('nkhw,ck->nchw', x, pw) + pb[None, :, None, None]
    y = jnp.maximum(_ln_ref(y, params['norm_g'], params['norm_b']), 0.0)
    for blk in params['blocks']:
        yn = _ln_ref(y, blk['ln1_g'], blk['ln1_b'])
        avg = jnp.mean(yn, axis=1, keepdims=True)
        mx = jnp.max(yn, axis=1, keepdims=True)
        feat = jnp.concatenate([avg, mx], axis=1)
        conv = lax.conv_general_dilated(
            feat, blk['conv_w'][None], window_strides=(1, 1), padding='SAME',
            dimension_numbers=('NCHW', 'OIHW', 'NCHW')) + blk['conv_b'].reshape(1, 1, 1, 1)
        attn = jnp.tanh(conv)
        y = y + (yn * attn + yn)
        zn = _ln_ref(y, blk['ln2_g'], blk['ln2_b'])
        h = jax.nn.gelu(zn @ blk['fc1_w'] + blk['fc1_b'], approximate=False)
        y = y + (h @ blk['fc2_w'] + blk['fc2_b'])
    return _ln_ref(y, params['norm_g'], params['norm_b'])


# ------------------------------------ main ------------------------------------
if __name__ == "__main__":
    N, in_c_spa, H = 2, 4, 8
    embed_dim = 32          # last dim == LayerNorm / Linear feature dim
    depth_spa = 2
    ksize = 3               # kernel_size_spa (odd -> symmetric 'same' padding)
    assert ksize % 2 == 1

    key = jax.random.PRNGKey(0)
    kp, kx = jax.random.split(key)
    params = init_params(kp, in_c_spa, embed_dim, depth_spa, ksize)
    x = jax.random.normal(kx, (N, 2, H, embed_dim), jnp.float32)  # NCHW, C=2

    fwd = jax.jit(spatial_forward, static_argnums=2)
    out = jax.block_until_ready(fwd(x, params, ksize))
    assert out.shape == (N, in_c_spa, H, embed_dim)

    ref = reference_forward(x, params, ksize)
    max_err = float(jnp.max(jnp.abs(out - ref)))
    if not jnp.allclose(out, ref, atol=5e-3, rtol=5e-3):
        raise AssertionError(f"Pallas output mismatch vs reference, max abs err = {max_err}")

    print("KERNEL_OK")
</pallas_src>

<mosaic_0001>
module attributes {stable_mosaic.version = 11 : i64} {
  func.func @fused_spatial_kernel(%arg0: i32, %arg1: memref<1x2x8x32xf32, #tpu.memory_space<vmem>>, %arg2: memref<32x16xf32, #tpu.memory_space<vmem>>, %arg3: memref<32x1xf32, #tpu.memory_space<vmem>>, %arg4: memref<1x32xf32, #tpu.memory_space<vmem>>, %arg5: memref<1x32xf32, #tpu.memory_space<vmem>>, %arg6: memref<3x8x8xf32, #tpu.memory_space<vmem>>, %arg7: memref<12x32x32xf32, #tpu.memory_space<vmem>>, %arg8: memref<2x1x1xf32, #tpu.memory_space<vmem>>, %arg9: memref<2x1x32xf32, #tpu.memory_space<vmem>>, %arg10: memref<2x1x32xf32, #tpu.memory_space<vmem>>, %arg11: memref<2x1x32xf32, #tpu.memory_space<vmem>>, %arg12: memref<2x1x32xf32, #tpu.memory_space<vmem>>, %arg13: memref<2x32x128xf32, #tpu.memory_space<vmem>>, %arg14: memref<2x1x128xf32, #tpu.memory_space<vmem>>, %arg15: memref<2x128x32xf32, #tpu.memory_space<vmem>>, %arg16: memref<2x1x32xf32, #tpu.memory_space<vmem>>, %arg17: memref<1x4x8x32xf32, #tpu.memory_space<vmem>>) attributes {dimension_semantics = [#tpu.dimension_semantics<parallel>], iteration_bounds = array<i64: 2>, scalar_prefetch = 0 : i64, scratch_operands = 0 : i64, tpu.core_type = #tpu.core_type<tc>, window_params = [{transform_indices = @transform_0, window_bounds = array<i64: 1, 2, 8, 32>}, {pipeline_mode = #tpu.pipeline_mode<synchronous>, transform_indices = @transform_1, window_bounds = array<i64: 32, 16>}, {pipeline_mode = #tpu.pipeline_mode<synchronous>, transform_indices = @transform_2, window_bounds = array<i64: 32, 1>}, {pipeline_mode = #tpu.pipeline_mode<synchronous>, transform_indices = @transform_3, window_bounds = array<i64: 1, 32>}, {pipeline_mode = #tpu.pipeline_mode<synchronous>, transform_indices = @transform_4, window_bounds = array<i64: 1, 32>}, {pipeline_mode = #tpu.pipeline_mode<synchronous>, transform_indices = @transform_5, window_bounds = array<i64: 3, 8, 8>}, {pipeline_mode = #tpu.pipeline_mode<synchronous>, transform_indices = @transform_6, window_bounds = array<i64: 12, 32, 32>}, {pipeline_mode = #tpu.pipeline_mode<synchronous>, transform_indices = @transform_7, window_bounds = array<i64: 2, 1, 1>}, {pipeline_mode = #tpu.pipeline_mode<synchronous>, transform_indices = @transform_8, window_bounds = array<i64: 2, 1, 32>}, {pipeline_mode = #tpu.pipeline_mode<synchronous>, transform_indices = @transform_9, window_bounds = array<i64: 2, 1, 32>}, {pipeline_mode = #tpu.pipeline_mode<synchronous>, transform_indices = @transform_10, window_bounds = array<i64: 2, 1, 32>}, {pipeline_mode = #tpu.pipeline_mode<synchronous>, transform_indices = @transform_11, window_bounds = array<i64: 2, 1, 32>}, {pipeline_mode = #tpu.pipeline_mode<synchronous>, transform_indices = @transform_12, window_bounds = array<i64: 2, 32, 128>}, {pipeline_mode = #tpu.pipeline_mode<synchronous>, transform_indices = @transform_13, window_bounds = array<i64: 2, 1, 128>}, {pipeline_mode = #tpu.pipeline_mode<synchronous>, transform_indices = @transform_14, window_bounds = array<i64: 2, 128, 32>}, {pipeline_mode = #tpu.pipeline_mode<synchronous>, transform_indices = @transform_15, window_bounds = array<i64: 2, 1, 32>}, {transform_indices = @transform_16, window_bounds = array<i64: 1, 4, 8, 32>}]} {
    %c0 = arith.constant 0 : index
    %c0_0 = arith.constant 0 : index
    %c0_1 = arith.constant 0 : index
    %c0_2 = arith.constant 0 : index
    %0 = vector.load %arg1[%c0, %c0_0, %c0_1, %c0_2] : memref<1x2x8x32xf32, #tpu.memory_space<vmem>>, vector<1x2x8x32xf32>
    %1 = vector.shape_cast %0 : vector<1x2x8x32xf32> to vector<16x32xf32>
    %c0_3 = arith.constant 0 : index
    %c0_4 = arith.constant 0 : index
    %2 = vector.load %arg2[%c0_3, %c0_4] : memref<32x16xf32, #tpu.memory_space<vmem>>, vector<32x16xf32>
    %cst = arith.constant dense<0.000000e+00> : vector<32x32xf32>
    %3 = tpu.matmul %2, %1, %cst {dimension_numbers = #tpu.dot_dimension_numbers<[1], [0], [0], [1], [0, 0, 1, 1], [], []>} : vector<32x16xf32>, vector<16x32xf32>, vector<32x32xf32> -> vector<32x32xf32>
    %c0_5 = arith.constant 0 : index
    %c0_6 = arith.constant 0 : index
    %4 = vector.load %arg3[%c0_5, %c0_6] : memref<32x1xf32, #tpu.memory_space<vmem>>, vector<32x1xf32>
    %5 = vector.broadcast %4 : vector<32x1xf32> to vector<32x32xf32>
    %6 = arith.addf %3, %5 : vector<32x32xf32>
    %c0_7 = arith.constant 0 : index
    %c0_8 = arith.constant 0 : index
    %7 = vector.load %arg4[%c0_7, %c0_8] : memref<1x32xf32, #tpu.memory_space<vmem>>, vector<1x32xf32>
    %c0_9 = arith.constant 0 : index
    %c0_10 = arith.constant 0 : index
    %8 = vector.load %arg5[%c0_9, %c0_10] : memref<1x32xf32, #tpu.memory_space<vmem>>, vector<1x32xf32>
    %cst_11 = arith.constant dense<0.000000e+00> : vector<32xf32>
    %9 = vector.multi_reduction <add>, %6, %cst_11 [1] : vector<32x32xf32> to vector<32xf32>
    %10 = vector.shape_cast %9 : vector<32xf32> to vector<32x1xf32>
    %cst_12 = arith.constant 3.200000e+01 : f32
    %11 = vector.broadcast %cst_12 : f32 to vector<32x1xf32>
    %12 = arith.divf %10, %11 : vector<32x1xf32>
    %13 = vector.broadcast %12 : vector<32x1xf32> to vector<32x32xf32>
    %14 = arith.subf %6, %13 : vector<32x32xf32>
    %15 = arith.mulf %14, %14 : vector<32x32xf32>
    %cst_13 = arith.constant dense<0.000000e+00> : vector<32xf32>
    %16 = vector.multi_reduction <add>, %15, %cst_13 [1] : vector<32x32xf32> to vector<32xf32>
    %17 = vector.shape_cast %16 : vector<32xf32> to vector<32x1xf32>
    %cst_14 = arith.constant 3.200000e+01 : f32
    %18 = vector.broadcast %cst_14 : f32 to vector<32x1xf32>
    %19 = arith.divf %17, %18 : vector<32x1xf32>
    %cst_15 = arith.constant 9.99999974E-6 : f32
    %20 = vector.broadcast %cst_15 : f32 to vector<32x1xf32>
    %21 = arith.addf %19, %20 : vector<32x1xf32>
    %22 = math.rsqrt %21 : vector<32x1xf32>
    %23 = vector.broadcast %22 : vector<32x1xf32> to vector<32x32xf32>
    %24 = arith.mulf %14, %23 : vector<32x32xf32>
    %25 = vector.broadcast %7 : vector<1x32xf32> to vector<32x32xf32>
    %26 = arith.mulf %24, %25 : vector<32x32xf32>
    %27 = vector.broadcast %8 : vector<1x32xf32> to vector<32x32xf32>
    %28 = arith.addf %26, %27 : vector<32x32xf32>
    %cst_16 = arith.constant 0.000000e+00 : f32
    %29 = vector.broadcast %cst_16 : f32 to vector<32x32xf32>
    %30 = arith.maximumf %28, %29 : vector<32x32xf32>
    %c0_17 = arith.constant 0 : index
    %c0_18 = arith.constant 0 : index
    %c0_19 = arith.constant 0 : index
    %31 = vector.load %arg9[%c0_17, %c0_18, %c0_19] : memref<2x1x32xf32, #tpu.memory_space<vmem>>, vector<1x1x32xf32>
    %32 = vector.shape_cast %31 : vector<1x1x32xf32> to vector<1x32xf32>
    %c0_20 = arith.constant 0 : index
    %c0_21 = arith.constant 0 : index
    %c0_22 = arith.constant 0 : index
    %33 = vector.load %arg10[%c0_20, %c0_21, %c0_22] : memref<2x1x32xf32, #tpu.memory_space<vmem>>, vector<1x1x32xf32>
    %34 = vector.shape_cast %33 : vector<1x1x32xf32> to vector<1x32xf32>
    %cst_23 = arith.constant dense<0.000000e+00> : vector<32xf32>
    %35 = vector.multi_reduction <add>, %30, %cst_23 [1] : vector<32x32xf32> to vector<32xf32>
    %36 = vector.shape_cast %35 : vector<32xf32> to vector<32x1xf32>
    %cst_24 = arith.constant 3.200000e+01 : f32
    %37 = vector.broadcast %cst_24 : f32 to vector<32x1xf32>
    %38 = arith.divf %36, %37 : vector<32x1xf32>
    %39 = vector.broadcast %38 : vector<32x1xf32> to vector<32x32xf32>
    %40 = arith.subf %30, %39 : vector<32x32xf32>
    %41 = arith.mulf %40, %40 : vector<32x32xf32>
    %cst_25 = arith.constant dense<0.000000e+00> : vector<32xf32>
    %42 = vector.multi_reduction <add>, %41, %cst_25 [1] : vector<32x32xf32> to vector<32xf32>
    %43 = vector.shape_cast %42 : vector<32xf32> to vector<32x1xf32>
    %cst_26 = arith.constant 3.200000e+01 : f32
    %44 = vector.broadcast %cst_26 : f32 to vector<32x1xf32>
    %45 = arith.divf %43, %44 : vector<32x1xf32>
    %cst_27 = arith.constant 9.99999974E-6 : f32
    %46 = vector.broadcast %cst_27 : f32 to vector<32x1xf32>
    %47 = arith.addf %45, %46 : vector<32x1xf32>
    %48 = math.rsqrt %47 : vector<32x1xf32>
    %49 = vector.broadcast %48 : vector<32x1xf32> to vector<32x32xf32>
    %50 = arith.mulf %40, %49 : vector<32x32xf32>
    %51 = vector.broadcast %32 : vector<1x32xf32> to vector<32x32xf32>
    %52 = arith.mulf %50, %51 : vector<32x32xf32>
    %53 = vector.broadcast %34 : vector<1x32xf32> to vector<32x32xf32>
    %54 = arith.addf %52, %53 : vector<32x32xf32>
    %55 = vector.shape_cast %54 : vector<32x32xf32> to vector<4x8x32xf32>
    %cst_28 = arith.constant dense<0.000000e+00> : vector<8x32xf32>
    %56 = vector.multi_reduction <add>, %55, %cst_28 [0] : vector<4x8x32xf32> to vector<8x32xf32>
    %cst_29 = arith.constant 4.000000e+00 : f32
    %57 = vector.broadcast %cst_29 : f32 to vector<8x32xf32>
    %58 = arith.divf %56, %57 : vector<8x32xf32>
    %cst_30 = arith.constant dense<0xFF800000> : vector<8x32xf32>
    %59 = vector.multi_reduction <maximumf>, %55, %cst_30 [0] : vector<4x8x32xf32> to vector<8x32xf32>
    %cst_31 = arith.constant 0.000000e+00 : f32
    %60 = vector.broadcast %cst_31 : f32 to vector<8x32xf32>
    %c0_32 = arith.constant 0 : index
    %c0_33 = arith.constant 0 : index
    %c0_34 = arith.constant 0 : index
    %61 = vector.load %arg7[%c0_32, %c0_33, %c0_34] : memref<12x32x32xf32, #tpu.memory_space<vmem>>, vector<1x32x32xf32>
    %62 = vector.shape_cast %61 : vector<1x32x32xf32> to vector<32x32xf32>
    %c3 = arith.constant 3 : index
    %c0_35 = arith.constant 0 : index
    %c0_36 = arith.constant 0 : index
    %63 = vector.load %arg7[%c3, %c0_35, %c0_36] : memref<12x32x32xf32, #tpu.memory_space<vmem>>, vector<1x32x32xf32>
    %64 = vector.shape_cast %63 : vector<1x32x32xf32> to vector<32x32xf32>
    %cst_37 = arith.constant dense<0.000000e+00> : vector<8x32xf32>
    %65 = tpu.matmul %58, %62, %cst_37 {dimension_numbers = #tpu.dot_dimension_numbers<[1], [0], [0], [1], [0, 0, 1, 1], [], []>} : vector<8x32xf32>, vector<32x32xf32>, vector<8x32xf32> -> vector<8x32xf32>
    %cst_38 = arith.constant dense<0.000000e+00> : vector<8x32xf32>
    %66 = tpu.matmul %59, %64, %cst_38 {dimension_numbers = #tpu.dot_dimension_numbers<[1], [0], [0], [1], [0, 0, 1, 1], [], []>} : vector<8x32xf32>, vector<32x32xf32>, vector<8x32xf32> -> vector<8x32xf32>
    %67 = arith.addf %65, %66 : vector<8x32xf32>
    %c0_39 = arith.constant 0 : index
    %c0_40 = arith.constant 0 : index
    %c0_41 = arith.constant 0 : index
    %68 = vector.load %arg6[%c0_39, %c0_40, %c0_41] : memref<3x8x8xf32, #tpu.memory_space<vmem>>, vector<1x8x8xf32>
    %69 = vector.shape_cast %68 : vector<1x8x8xf32> to vector<8x8xf32>
    %cst_42 = arith.constant dense<0.000000e+00> : vector<8x32xf32>
    %70 = tpu.matmul %69, %67, %cst_42 {dimension_numbers = #tpu.dot_dimension_numbers<[1], [0], [0], [1], [0, 0, 1, 1], [], []>} : vector<8x8xf32>, vector<8x32xf32>, vector<8x32xf32> -> vector<8x32xf32>
    %71 = arith.addf %60, %70 : vector<8x32xf32>
    %c1 = arith.constant 1 : index
    %c0_43 = arith.constant 0 : index
    %c0_44 = arith.constant 0 : index
    %72 = vector.load %arg7[%c1, %c0_43, %c0_44] : memref<12x32x32xf32, #tpu.memory_space<vmem>>, vector<1x32x32xf32>
    %73 = vector.shape_cast %72 : vector<1x32x32xf32> to vector<32x32xf32>
    %c4 = arith.constant 4 : index
    %c0_45 = arith.constant 0 : index
    %c0_46 = arith.constant 0 : index
    %74 = vector.load %arg7[%c4, %c0_45, %c0_46] : memref<12x32x32xf32, #tpu.memory_space<vmem>>, vector<1x32x32xf32>
    %75 = vector.shape_cast %74 : vector<1x32x32xf32> to vector<32x32xf32>
    %cst_47 = arith.constant dense<0.000000e+00> : vector<8x32xf32>
    %76 = tpu.matmul %58, %73, %cst_47 {dimension_numbers = #tpu.dot_dimension_numbers<[1], [0], [0], [1], [0, 0, 1, 1], [], []>} : vector<8x32xf32>, vector<32x32xf32>, vector<8x32xf32> -> vector<8x32xf32>
    %cst_48 = arith.constant dense<0.000000e+00> : vector<8x32xf32>
    %77 = tpu.matmul %59, %75, %cst_48 {dimension_numbers = #tpu.dot_dimension_numbers<[1], [0], [0], [1], [0, 0, 1, 1], [], []>} : vector<8x32xf32>, vector<32x32xf32>, vector<8x32xf32> -> vector<8x32xf32>
    %78 = arith.addf %76, %77 : vector<8x32xf32>
    %c1_49 = arith.constant 1 : index
    %c0_50 = arith.constant 0 : index
    %c0_51 = arith.constant 0 : index
    %79 = vector.load %arg6[%c1_49, %c0_50, %c0_51] : memref<3x8x8xf32, #tpu.memory_space<vmem>>, vector<1x8x8xf32>
    %80 = vector.shape_cast %79 : vector<1x8x8xf32> to vector<8x8xf32>
    %cst_52 = arith.constant dense<0.000000e+00> : vector<8x32xf32>
    %81 = tpu.matmul %80, %78, %cst_52 {dimension_numbers = #tpu.dot_dimension_numbers<[1], [0], [0], [1], [0, 0, 1, 1], [], []>} : vector<8x8xf32>, vector<8x32xf32>, vector<8x32xf32> -> vector<8x32xf32>
    %82 = arith.addf %71, %81 : vector<8x32xf32>
    %c2 = arith.constant 2 : index
    %c0_53 = arith.constant 0 : index
    %c0_54 = arith.constant 0 : index
    %83 = vector.load %arg7[%c2, %c0_53, %c0_54] : memref<12x32x32xf32, #tpu.memory_space<vmem>>, vector<1x32x32xf32>
    %84 = vector.shape_cast %83 : vector<1x32x32xf32> to vector<32x32xf32>
    %c5 = arith.constant 5 : index
    %c0_55 = arith.constant 0 : index
    %c0_56 = arith.constant 0 : index
    %85 = vector.load %arg7[%c5, %c0_55, %c0_56] : memref<12x32x32xf32, #tpu.memory_space<vmem>>, vector<1x32x32xf32>
    %86 = vector.shape_cast %85 : vector<1x32x32xf32> to vector<32x32xf32>
    %cst_57 = arith.constant dense<0.000000e+00> : vector<8x32xf32>
    %87 = tpu.matmul %58, %84, %cst_57 {dimension_numbers = #tpu.dot_dimension_numbers<[1], [0], [0], [1], [0, 0, 1, 1], [], []>} : vector<8x32xf32>, vector<32x32xf32>, vector<8x32xf32> -> vector<8x32xf32>
    %cst_58 = arith.constant dense<0.000000e+00> : vector<8x32xf32>
    %88 = tpu.matmul %59, %86, %cst_58 {dimension_numbers = #tpu.dot_dimension_numbers<[1], [0], [0], [1], [0, 0, 1, 1], [], []>} : vector<8x32xf32>, vector<32x32xf32>, vector<8x32xf32> -> vector<8x32xf32>
    %89 = arith.addf %87, %88 : vector<8x32xf32>
    %c2_59 = arith.constant 2 : index
    %c0_60 = arith.constant 0 : index
    %c0_61 = arith.constant 0 : index
    %90 = vector.load %arg6[%c2_59, %c0_60, %c0_61] : memref<3x8x8xf32, #tpu.memory_space<vmem>>, vector<1x8x8xf32>
    %91 = vector.shape_cast %90 : vector<1x8x8xf32> to vector<8x8xf32>
    %cst_62 = arith.constant dense<0.000000e+00> : vector<8x32xf32>
    %92 = tpu.matmul %91, %89, %cst_62 {dimension_numbers = #tpu.dot_dimension_numbers<[1], [0], [0], [1], [0, 0, 1, 1], [], []>} : vector<8x8xf32>, vector<8x32xf32>, vector<8x32xf32> -> vector<8x32xf32>
    %93 = arith.addf %82, %92 : vector<8x32xf32>
    %c0_63 = arith.constant 0 : index
    %c0_64 = arith.constant 0 : index
    %c0_65 = arith.constant 0 : index
    %94 = vector.load %arg8[%c0_63, %c0_64, %c0_65] : memref<2x1x1xf32, #tpu.memory_space<vmem>>, vector<1x1x1xf32>
    %95 = vector.shape_cast %94 : vector<1x1x1xf32> to vector<1x1xf32>
    %96 = vector.broadcast %95 : vector<1x1xf32> to vector<8x32xf32>
    %97 = arith.addf %93, %96 : vector<8x32xf32>
    %98 = math.tanh %97 : vector<8x32xf32>
    %99 = vector.shape_cast %98 : vector<8x32xf32> to vector<1x8x32xf32>
    %100 = vector.broadcast %99 : vector<1x8x32xf32> to vector<4x8x32xf32>
    %101 = arith.mulf %55, %100 : vector<4x8x32xf32>
    %102 = arith.addf %101, %55 : vector<4x8x32xf32>
    %103 = vector.shape_cast %102 : vector<4x8x32xf32> to vector<32x32xf32>
    %104 = arith.addf %30, %103 : vector<32x32xf32>
    %c0_66 = arith.constant 0 : index
    %c0_67 = arith.constant 0 : index
    %c0_68 = arith.constant 0 : index
    %105 = vector.load %arg11[%c0_66, %c0_67, %c0_68] : memref<2x1x32xf32, #tpu.memory_space<vmem>>, vector<1x1x32xf32>
    %106 = vector.shape_cast %105 : vector<1x1x32xf32> to vector<1x32xf32>
    %c0_69 = arith.constant 0 : index
    %c0_70 = arith.constant 0 : index
    %c0_71 = arith.constant 0 : index
    %107 = vector.load %arg12[%c0_69, %c0_70, %c0_71] : memref<2x1x32xf32, #tpu.memory_space<vmem>>, vector<1x1x32xf32>
    %108 = vector.shape_cast %107 : vector<1x1x32xf32> to vector<1x32xf32>
    %cst_72 = arith.constant dense<0.000000e+00> : vector<32xf32>
    %109 = vector.multi_reduction <add>, %104, %cst_72 [1] : vector<32x32xf32> to vector<32xf32>
    %110 = vector.shape_cast %109 : vector<32xf32> to vector<32x1xf32>
    %cst_73 = arith.constant 3.200000e+01 : f32
    %111 = vector.broadcast %cst_73 : f32 to vector<32x1xf32>
    %112 = arith.divf %110, %111 : vector<32x1xf32>
    %113 = vector.broadcast %112 : vector<32x1xf32> to vector<32x32xf32>
    %114 = arith.subf %104, %113 : vector<32x32xf32>
    %115 = arith.mulf %114, %114 : vector<32x32xf32>
    %cst_74 = arith.constant dense<0.000000e+00> : vector<32xf32>
    %116 = vector.multi_reduction <add>, %115, %cst_74 [1] : vector<32x32xf32> to vector<32xf32>
    %117 = vector.shape_cast %116 : vector<32xf32> to vector<32x1xf32>
    %cst_75 = arith.constant 3.200000e+01 : f32
    %118 = vector.broadcast %cst_75 : f32 to vector<32x1xf32>
    %119 = arith.divf %117, %118 : vector<32x1xf32>
    %cst_76 = arith.constant 9.99999974E-6 : f32
    %120 = vector.broadcast %cst_76 : f32 to vector<32x1xf32>
    %121 = arith.addf %119, %120 : vector<32x1xf32>
    %122 = math.rsqrt %121 : vector<32x1xf32>
    %123 = vector.broadcast %122 : vector<32x1xf32> to vector<32x32xf32>
    %124 = arith.mulf %114, %123 : vector<32x32xf32>
    %125 = vector.broadcast %106 : vector<1x32xf32> to vector<32x32xf32>
    %126 = arith.mulf %124, %125 : vector<32x32xf32>
    %127 = vector.broadcast %108 : vector<1x32xf32> to vector<32x32xf32>
    %128 = arith.addf %126, %127 : vector<32x32xf32>
    %c0_77 = arith.constant 0 : index
    %c0_78 = arith.constant 0 : index
    %c0_79 = arith.constant 0 : index
    %129 = vector.load %arg13[%c0_77, %c0_78, %c0_79] : memref<2x32x128xf32, #tpu.memory_space<vmem>>, vector<1x32x128xf32>
    %130 = vector.shape_cast %129 : vector<1x32x128xf32> to vector<32x128xf32>
    %cst_80 = arith.constant dense<0.000000e+00> : vector<32x128xf32>
    %131 = tpu.matmul %128, %130, %cst_80 {dimension_numbers = #tpu.dot_dimension_numbers<[1], [0], [0], [1], [0, 0, 1, 1], [], []>} : vector<32x32xf32>, vector<32x128xf32>, vector<32x128xf32> -> vector<32x128xf32>
    %c0_81 = arith.constant 0 : index
    %c0_82 = arith.constant 0 : index
    %c0_83 = arith.constant 0 : index
    %132 = vector.load %arg14[%c0_81, %c0_82, %c0_83] : memref<2x1x128xf32, #tpu.memory_space<vmem>>, vector<1x1x128xf32>
    %133 = vector.shape_cast %132 : vector<1x1x128xf32> to vector<1x128xf32>
    %134 = vector.broadcast %133 : vector<1x128xf32> to vector<32x128xf32>
    %135 = arith.addf %131, %134 : vector<32x128xf32>
    %cst_84 = arith.constant 5.000000e-01 : f32
    %136 = vector.broadcast %cst_84 : f32 to vector<32x128xf32>
    %137 = arith.mulf %136, %135 : vector<32x128xf32>
    %138 = arith.mulf %135, %135 : vector<32x128xf32>
    %139 = arith.mulf %138, %135 : vector<32x128xf32>
    %cst_85 = arith.constant 4.471500e-02 : f32
    %140 = vector.broadcast %cst_85 : f32 to vector<32x128xf32>
    %141 = arith.mulf %140, %139 : vector<32x128xf32>
    %142 = arith.addf %135, %141 : vector<32x128xf32>
    %cst_86 = arith.constant 0.797884583 : f32
    %143 = vector.broadcast %cst_86 : f32 to vector<32x128xf32>
    %144 = arith.mulf %143, %142 : vector<32x128xf32>
    %145 = math.tanh %144 : vector<32x128xf32>
    %cst_87 = arith.constant 1.000000e+00 : f32
    %146 = vector.broadcast %cst_87 : f32 to vector<32x128xf32>
    %147 = arith.addf %146, %145 : vector<32x128xf32>
    %148 = arith.mulf %137, %147 : vector<32x128xf32>
    %c0_88 = arith.constant 0 : index
    %c0_89 = arith.constant 0 : index
    %c0_90 = arith.constant 0 : index
    %149 = vector.load %arg15[%c0_88, %c0_89, %c0_90] : memref<2x128x32xf32, #tpu.memory_space<vmem>>, vector<1x128x32xf32>
    %150 = vector.shape_cast %149 : vector<1x128x32xf32> to vector<128x32xf32>
    %cst_91 = arith.constant dense<0.000000e+00> : vector<32x32xf32>
    %151 = tpu.matmul %148, %150, %cst_91 {dimension_numbers = #tpu.dot_dimension_numbers<[1], [0], [0], [1], [0, 0, 1, 1], [], []>} : vector<32x128xf32>, vector<128x32xf32>, vector<32x32xf32> -> vector<32x32xf32>
    %152 = arith.addf %104, %151 : vector<32x32xf32>
    %c0_92 = arith.constant 0 : index
    %c0_93 = arith.constant 0 : index
    %c0_94 = arith.constant 0 : index
    %153 = vector.load %arg16[%c0_92, %c0_93, %c0_94] : memref<2x1x32xf32, #tpu.memory_space<vmem>>, vector<1x1x32xf32>
    %154 = vector.shape_cast %153 : vector<1x1x32xf32> to vector<1x32xf32>
    %155 = vector.broadcast %154 : vector<1x32xf32> to vector<32x32xf32>
    %156 = arith.addf %152, %155 : vector<32x32xf32>
    %c1_95 = arith.constant 1 : index
    %c0_96 = arith.constant 0 : index
    %c0_97 = arith.constant 0 : index
    %157 = vector.load %arg9[%c1_95, %c0_96, %c0_97] : memref<2x1x32xf32, #tpu.memory_space<vmem>>, vector<1x1x32xf32>
    %158 = vector.shape_cast %157 : vector<1x1x32xf32> to vector<1x32xf32>
    %c1_98 = arith.constant 1 : index
    %c0_99 = arith.constant 0 : index
    %c0_100 = arith.constant 0 : index
    %159 = vector.load %arg10[%c1_98, %c0_99, %c0_100] : memref<2x1x32xf32, #tpu.memory_space<vmem>>, vector<1x1x32xf32>
    %160 = vector.shape_cast %159 : vector<1x1x32xf32> to vector<1x32xf32>
    %cst_101 = arith.constant dense<0.000000e+00> : vector<32xf32>
    %161 = vector.multi_reduction <add>, %156, %cst_101 [1] : vector<32x32xf32> to vector<32xf32>
    %162 = vector.shape_cast %161 : vector<32xf32> to vector<32x1xf32>
    %cst_102 = arith.constant 3.200000e+01 : f32
    %163 = vector.broadcast %cst_102 : f32 to vector<32x1xf32>
    %164 = arith.divf %162, %163 : vector<32x1xf32>
    %165 = vector.broadcast %164 : vector<32x1xf32> to vector<32x32xf32>
    %166 = arith.subf %156, %165 : vector<32x32xf32>
    %167 = arith.mulf %166, %166 : vector<32x32xf32>
    %cst_103 = arith.constant dense<0.000000e+00> : vector<32xf32>
    %168 = vector.multi_reduction <add>, %167, %cst_103 [1] : vector<32x32xf32> to vector<32xf32>
    %169 = vector.shape_cast %168 : vector<32xf32> to vector<32x1xf32>
    %cst_104 = arith.constant 3.200000e+01 : f32
    %170 = vector.broadcast %cst_104 : f32 to vector<32x1xf32>
    %171 = arith.divf %169, %170 : vector<32x1xf32>
    %cst_105 = arith.constant 9.99999974E-6 : f32
    %172 = vector.broadcast %cst_105 : f32 to vector<32x1xf32>
    %173 = arith.addf %171, %172 : vector<32x1xf32>
    %174 = math.rsqrt %173 : vector<32x1xf32>
    %175 = vector.broadcast %174 : vector<32x1xf32> to vector<32x32xf32>
    %176 = arith.mulf %166, %175 : vector<32x32xf32>
    %177 = vector.broadcast %158 : vector<1x32xf32> to vector<32x32xf32>
    %178 = arith.mulf %176, %177 : vector<32x32xf32>
    %179 = vector.broadcast %160 : vector<1x32xf32> to vector<32x32xf32>
    %180 = arith.addf %178, %179 : vector<32x32xf32>
    %181 = vector.shape_cast %180 : vector<32x32xf32> to vector<4x8x32xf32>
    %cst_106 = arith.constant dense<0.000000e+00> : vector<8x32xf32>
    %182 = vector.multi_reduction <add>, %181, %cst_106 [0] : vector<4x8x32xf32> to vector<8x32xf32>
    %cst_107 = arith.constant 4.000000e+00 : f32
    %183 = vector.broadcast %cst_107 : f32 to vector<8x32xf32>
    %184 = arith.divf %182, %183 : vector<8x32xf32>
    %cst_108 = arith.constant dense<0xFF800000> : vector<8x32xf32>
    %185 = vector.multi_reduction <maximumf>, %181, %cst_108 [0] : vector<4x8x32xf32> to vector<8x32xf32>
    %cst_109 = arith.constant 0.000000e+00 : f32
    %186 = vector.broadcast %cst_109 : f32 to vector<8x32xf32>
    %c6 = arith.constant 6 : index
    %c0_110 = arith.constant 0 : index
    %c0_111 = arith.constant 0 : index
    %187 = vector.load %arg7[%c6, %c0_110, %c0_111] : memref<12x32x32xf32, #tpu.memory_space<vmem>>, vector<1x32x32xf32>
    %188 = vector.shape_cast %187 : vector<1x32x32xf32> to vector<32x32xf32>
    %c9 = arith.constant 9 : index
    %c0_112 = arith.constant 0 : index
    %c0_113 = arith.constant 0 : index
    %189 = vector.load %arg7[%c9, %c0_112, %c0_113] : memref<12x32x32xf32, #tpu.memory_space<vmem>>, vector<1x32x32xf32>
    %190 = vector.shape_cast %189 : vector<1x32x32xf32> to vector<32x32xf32>
    %cst_114 = arith.constant dense<0.000000e+00> : vector<8x32xf32>
    %191 = tpu.matmul %184, %188, %cst_114 {dimension_numbers = #tpu.dot_dimension_numbers<[1], [0], [0], [1], [0, 0, 1, 1], [], []>} : vector<8x32xf32>, vector<32x32xf32>, vector<8x32xf32> -> vector<8x32xf32>
    %cst_115 = arith.constant dense<0.000000e+00> : vector<8x32xf32>
    %192 = tpu.matmul %185, %190, %cst_115 {dimension_numbers = #tpu.dot_dimension_numbers<[1], [0], [0], [1], [0, 0, 1, 1], [], []>} : vector<8x32xf32>, vector<32x32xf32>, vector<8x32xf32> -> vector<8x32xf32>
    %193 = arith.addf %191, %192 : vector<8x32xf32>
    %c0_116 = arith.constant 0 : index
    %c0_117 = arith.constant 0 : index
    %c0_118 = arith.constant 0 : index
    %194 = vector.load %arg6[%c0_116, %c0_117, %c0_118] : memref<3x8x8xf32, #tpu.memory_space<vmem>>, vector<1x8x8xf32>
    %195 = vector.shape_cast %194 : vector<1x8x8xf32> to vector<8x8xf32>
    %cst_119 = arith.constant dense<0.000000e+00> : vector<8x32xf32>
    %196 = tpu.matmul %195, %193, %cst_119 {dimension_numbers = #tpu.dot_dimension_numbers<[1], [0], [0], [1], [0, 0, 1, 1], [], []>} : vector<8x8xf32>, vector<8x32xf32>, vector<8x32xf32> -> vector<8x32xf32>
    %197 = arith.addf %186, %196 : vector<8x32xf32>
    %c7 = arith.constant 7 : index
    %c0_120 = arith.constant 0 : index
    %c0_121 = arith.constant 0 : index
    %198 = vector.load %arg7[%c7, %c0_120, %c0_121] : memref<12x32x32xf32, #tpu.memory_space<vmem>>, vector<1x32x32xf32>
    %199 = vector.shape_cast %198 : vector<1x32x32xf32> to vector<32x32xf32>
    %c10 = arith.constant 10 : index
    %c0_122 = arith.constant 0 : index
    %c0_123 = arith.constant 0 : index
    %200 = vector.load %arg7[%c10, %c0_122, %c0_123] : memref<12x32x32xf32, #tpu.memory_space<vmem>>, vector<1x32x32xf32>
    %201 = vector.shape_cast %200 : vector<1x32x32xf32> to vector<32x32xf32>
    %cst_124 = arith.constant dense<0.000000e+00> : vector<8x32xf32>
    %202 = tpu.matmul %184, %199, %cst_124 {dimension_numbers = #tpu.dot_dimension_numbers<[1], [0], [0], [1], [0, 0, 1, 1], [], []>} : vector<8x32xf32>, vector<32x32xf32>, vector<8x32xf32> -> vector<8x32xf32>
    %cst_125 = arith.constant dense<0.000000e+00> : vector<8x32xf32>
    %203 = tpu.matmul %185, %201, %cst_125 {dimension_numbers = #tpu.dot_dimension_numbers<[1], [0], [0], [1], [0, 0, 1, 1], [], []>} : vector<8x32xf32>, vector<32x32xf32>, vector<8x32xf32> -> vector<8x32xf32>
    %204 = arith.addf %202, %203 : vector<8x32xf32>
    %c1_126 = arith.constant 1 : index
    %c0_127 = arith.constant 0 : index
    %c0_128 = arith.constant 0 : index
    %205 = vector.load %arg6[%c1_126, %c0_127, %c0_128] : memref<3x8x8xf32, #tpu.memory_space<vmem>>, vector<1x8x8xf32>
    %206 = vector.shape_cast %205 : vector<1x8x8xf32> to vector<8x8xf32>
    %cst_129 = arith.constant dense<0.000000e+00> : vector<8x32xf32>
    %207 = tpu.matmul %206, %204, %cst_129 {dimension_numbers = #tpu.dot_dimension_numbers<[1], [0], [0], [1], [0, 0, 1, 1], [], []>} : vector<8x8xf32>, vector<8x32xf32>, vector<8x32xf32> -> vector<8x32xf32>
    %208 = arith.addf %197, %207 : vector<8x32xf32>
    %c8 = arith.constant 8 : index
    %c0_130 = arith.constant 0 : index
    %c0_131 = arith.constant 0 : index
    %209 = vector.load %arg7[%c8, %c0_130, %c0_131] : memref<12x32x32xf32, #tpu.memory_space<vmem>>, vector<1x32x32xf32>
    %210 = vector.shape_cast %209 : vector<1x32x32xf32> to vector<32x32xf32>
    %c11 = arith.constant 11 : index
    %c0_132 = arith.constant 0 : index
    %c0_133 = arith.constant 0 : index
    %211 = vector.load %arg7[%c11, %c0_132, %c0_133] : memref<12x32x32xf32, #tpu.memory_space<vmem>>, vector<1x32x32xf32>
    %212 = vector.shape_cast %211 : vector<1x32x32xf32> to vector<32x32xf32>
    %cst_134 = arith.constant dense<0.000000e+00> : vector<8x32xf32>
    %213 = tpu.matmul %184, %210, %cst_134 {dimension_numbers = #tpu.dot_dimension_numbers<[1], [0], [0], [1], [0, 0, 1, 1], [], []>} : vector<8x32xf32>, vector<32x32xf32>, vector<8x32xf32> -> vector<8x32xf32>
    %cst_135 = arith.constant dense<0.000000e+00> : vector<8x32xf32>
    %214 = tpu.matmul %185, %212, %cst_135 {dimension_numbers = #tpu.dot_dimension_numbers<[1], [0], [0], [1], [0, 0, 1, 1], [], []>} : vector<8x32xf32>, vector<32x32xf32>, vector<8x32xf32> -> vector<8x32xf32>
    %215 = arith.addf %213, %214 : vector<8x32xf32>
    %c2_136 = arith.constant 2 : index
    %c0_137 = arith.constant 0 : index
    %c0_138 = arith.constant 0 : index
    %216 = vector.load %arg6[%c2_136, %c0_137, %c0_138] : memref<3x8x8xf32, #tpu.memory_space<vmem>>, vector<1x8x8xf32>
    %217 = vector.shape_cast %216 : vector<1x8x8xf32> to vector<8x8xf32>
    %cst_139 = arith.constant dense<0.000000e+00> : vector<8x32xf32>
    %218 = tpu.matmul %217, %215, %cst_139 {dimension_numbers = #tpu.dot_dimension_numbers<[1], [0], [0], [1], [0, 0, 1, 1], [], []>} : vector<8x8xf32>, vector<8x32xf32>, vector<8x32xf32> -> vector<8x32xf32>
    %219 = arith.addf %208, %218 : vector<8x32xf32>
    %c1_140 = arith.constant 1 : index
    %c0_141 = arith.constant 0 : index
    %c0_142 = arith.constant 0 : index
    %220 = vector.load %arg8[%c1_140, %c0_141, %c0_142] : memref<2x1x1xf32, #tpu.memory_space<vmem>>, vector<1x1x1xf32>
    %221 = vector.shape_cast %220 : vector<1x1x1xf32> to vector<1x1xf32>
    %222 = vector.broadcast %221 : vector<1x1xf32> to vector<8x32xf32>
    %223 = arith.addf %219, %222 : vector<8x32xf32>
    %224 = math.tanh %223 : vector<8x32xf32>
    %225 = vector.shape_cast %224 : vector<8x32xf32> to vector<1x8x32xf32>
    %226 = vector.broadcast %225 : vector<1x8x32xf32> to vector<4x8x32xf32>
    %227 = arith.mulf %181, %226 : vector<4x8x32xf32>
    %228 = arith.addf %227, %181 : vector<4x8x32xf32>
    %229 = vector.shape_cast %228 : vector<4x8x32xf32> to vector<32x32xf32>
    %230 = arith.addf %156, %229 : vector<32x32xf32>
    %c1_143 = arith.constant 1 : index
    %c0_144 = arith.constant 0 : index
    %c0_145 = arith.constant 0 : index
    %231 = vector.load %arg11[%c1_143, %c0_144, %c0_145] : memref<2x1x32xf32, #tpu.memory_space<vmem>>, vector<1x1x32xf32>
    %232 = vector.shape_cast %231 : vector<1x1x32xf32> to vector<1x32xf32>
    %c1_146 = arith.constant 1 : index
    %c0_147 = arith.constant 0 : index
    %c0_148 = arith.constant 0 : index
    %233 = vector.load %arg12[%c1_146, %c0_147, %c0_148] : memref<2x1x32xf32, #tpu.memory_space<vmem>>, vector<1x1x32xf32>
    %234 = vector.shape_cast %233 : vector<1x1x32xf32> to vector<1x32xf32>
    %cst_149 = arith.constant dense<0.000000e+00> : vector<32xf32>
    %235 = vector.multi_reduction <add>, %230, %cst_149 [1] : vector<32x32xf32> to vector<32xf32>
    %236 = vector.shape_cast %235 : vector<32xf32> to vector<32x1xf32>
    %cst_150 = arith.constant 3.200000e+01 : f32
    %237 = vector.broadcast %cst_150 : f32 to vector<32x1xf32>
    %238 = arith.divf %236, %237 : vector<32x1xf32>
    %239 = vector.broadcast %238 : vector<32x1xf32> to vector<32x32xf32>
    %240 = arith.subf %230, %239 : vector<32x32xf32>
    %241 = arith.mulf %240, %240 : vector<32x32xf32>
    %cst_151 = arith.constant dense<0.000000e+00> : vector<32xf32>
    %242 = vector.multi_reduction <add>, %241, %cst_151 [1] : vector<32x32xf32> to vector<32xf32>
    %243 = vector.shape_cast %242 : vector<32xf32> to vector<32x1xf32>
    %cst_152 = arith.constant 3.200000e+01 : f32
    %244 = vector.broadcast %cst_152 : f32 to vector<32x1xf32>
    %245 = arith.divf %243, %244 : vector<32x1xf32>
    %cst_153 = arith.constant 9.99999974E-6 : f32
    %246 = vector.broadcast %cst_153 : f32 to vector<32x1xf32>
    %247 = arith.addf %245, %246 : vector<32x1xf32>
    %248 = math.rsqrt %247 : vector<32x1xf32>
    %249 = vector.broadcast %248 : vector<32x1xf32> to vector<32x32xf32>
    %250 = arith.mulf %240, %249 : vector<32x32xf32>
    %251 = vector.broadcast %232 : vector<1x32xf32> to vector<32x32xf32>
    %252 = arith.mulf %250, %251 : vector<32x32xf32>
    %253 = vector.broadcast %234 : vector<1x32xf32> to vector<32x32xf32>
    %254 = arith.addf %252, %253 : vector<32x32xf32>
    %c1_154 = arith.constant 1 : index
    %c0_155 = arith.constant 0 : index
    %c0_156 = arith.constant 0 : index
    %255 = vector.load %arg13[%c1_154, %c0_155, %c0_156] : memref<2x32x128xf32, #tpu.memory_space<vmem>>, vector<1x32x128xf32>
    %256 = vector.shape_cast %255 : vector<1x32x128xf32> to vector<32x128xf32>
    %cst_157 = arith.constant dense<0.000000e+00> : vector<32x128xf32>
    %257 = tpu.matmul %254, %256, %cst_157 {dimension_numbers = #tpu.dot_dimension_numbers<[1], [0], [0], [1], [0, 0, 1, 1], [], []>} : vector<32x32xf32>, vector<32x128xf32>, vector<32x128xf32> -> vector<32x128xf32>
    %c1_158 = arith.constant 1 : index
    %c0_159 = arith.constant 0 : index
    %c0_160 = arith.constant 0 : index
    %258 = vector.load %arg14[%c1_158, %c0_159, %c0_160] : memref<2x1x128xf32, #tpu.memory_space<vmem>>, vector<1x1x128xf32>
    %259 = vector.shape_cast %258 : vector<1x1x128xf32> to vector<1x128xf32>
    %260 = vector.broadcast %259 : vector<1x128xf32> to vector<32x128xf32>
    %261 = arith.addf %257, %260 : vector<32x128xf32>
    %cst_161 = arith.constant 5.000000e-01 : f32
    %262 = vector.broadcast %cst_161 : f32 to vector<32x128xf32>
    %263 = arith.mulf %262, %261 : vector<32x128xf32>
    %264 = arith.mulf %261, %261 : vector<32x128xf32>
    %265 = arith.mulf %264, %261 : vector<32x128xf32>
    %cst_162 = arith.constant 4.471500e-02 : f32
    %266 = vector.broadcast %cst_162 : f32 to vector<32x128xf32>
    %267 = arith.mulf %266, %265 : vector<32x128xf32>
    %268 = arith.addf %261, %267 : vector<32x128xf32>
    %cst_163 = arith.constant 0.797884583 : f32
    %269 = vector.broadcast %cst_163 : f32 to vector<32x128xf32>
    %270 = arith.mulf %269, %268 : vector<32x128xf32>
    %271 = math.tanh %270 : vector<32x128xf32>
    %cst_164 = arith.constant 1.000000e+00 : f32
    %272 = vector.broadcast %cst_164 : f32 to vector<32x128xf32>
    %273 = arith.addf %272, %271 : vector<32x128xf32>
    %274 = arith.mulf %263, %273 : vector<32x128xf32>
    %c1_165 = arith.constant 1 : index
    %c0_166 = arith.constant 0 : index
    %c0_167 = arith.constant 0 : index
    %275 = vector.load %arg15[%c1_165, %c0_166, %c0_167] : memref<2x128x32xf32, #tpu.memory_space<vmem>>, vector<1x128x32xf32>
    %276 = vector.shape_cast %275 : vector<1x128x32xf32> to vector<128x32xf32>
    %cst_168 = arith.constant dense<0.000000e+00> : vector<32x32xf32>
    %277 = tpu.matmul %274, %276, %cst_168 {dimension_numbers = #tpu.dot_dimension_numbers<[1], [0], [0], [1], [0, 0, 1, 1], [], []>} : vector<32x128xf32>, vector<128x32xf32>, vector<32x32xf32> -> vector<32x32xf32>
    %278 = arith.addf %230, %277 : vector<32x32xf32>
    %c1_169 = arith.constant 1 : index
    %c0_170 = arith.constant 0 : index
    %c0_171 = arith.constant 0 : index
    %279 = vector.load %arg16[%c1_169, %c0_170, %c0_171] : memref<2x1x32xf32, #tpu.memory_space<vmem>>, vector<1x1x32xf32>
    %280 = vector.shape_cast %279 : vector<1x1x32xf32> to vector<1x32xf32>
    %281 = vector.broadcast %280 : vector<1x32xf32> to vector<32x32xf32>
    %282 = arith.addf %278, %281 : vector<32x32xf32>
    %cst_172 = arith.constant dense<0.000000e+00> : vector<32xf32>
    %283 = vector.multi_reduction <add>, %282, %cst_172 [1] : vector<32x32xf32> to vector<32xf32>
    %284 = vector.shape_cast %283 : vector<32xf32> to vector<32x1xf32>
    %cst_173 = arith.constant 3.200000e+01 : f32
    %285 = vector.broadcast %cst_173 : f32 to vector<32x1xf32>
    %286 = arith.divf %284, %285 : vector<32x1xf32>
    %287 = vector.broadcast %286 : vector<32x1xf32> to vector<32x32xf32>
    %288 = arith.subf %282, %287 : vector<32x32xf32>
    %289 = arith.mulf %288, %288 : vector<32x32xf32>
    %cst_174 = arith.constant dense<0.000000e+00> : vector<32xf32>
    %290 = vector.multi_reduction <add>, %289, %cst_174 [1] : vector<32x32xf32> to vector<32xf32>
    %291 = vector.shape_cast %290 : vector<32xf32> to vector<32x1xf32>
    %cst_175 = arith.constant 3.200000e+01 : f32
    %292 = vector.broadcast %cst_175 : f32 to vector<32x1xf32>
    %293 = arith.divf %291, %292 : vector<32x1xf32>
    %cst_176 = arith.constant 9.99999974E-6 : f32
    %294 = vector.broadcast %cst_176 : f32 to vector<32x1xf32>
    %295 = arith.addf %293, %294 : vector<32x1xf32>
    %296 = math.rsqrt %295 : vector<32x1xf32>
    %297 = vector.broadcast %296 : vector<32x1xf32> to vector<32x32xf32>
    %298 = arith.mulf %288, %297 : vector<32x32xf32>
    %299 = vector.broadcast %7 : vector<1x32xf32> to vector<32x32xf32>
    %300 = arith.mulf %298, %299 : vector<32x32xf32>
    %301 = vector.broadcast %8 : vector<1x32xf32> to vector<32x32xf32>
    %302 = arith.addf %300, %301 : vector<32x32xf32>
    %303 = vector.shape_cast %302 : vector<32x32xf32> to vector<1x4x8x32xf32>
    %c0_177 = arith.constant 0 : index
    %c0_178 = arith.constant 0 : index
    %c0_179 = arith.constant 0 : index
    %c0_180 = arith.constant 0 : index
    %304 = vector.load %arg17[%c0_177, %c0_178, %c0_179, %c0_180] : memref<1x4x8x32xf32, #tpu.memory_space<vmem>>, vector<1x4x8x32xf32>
    tpu.vector_store %arg17[%c0_177, %c0_178, %c0_179, %c0_180], %303 {strides = array<i32>} : memref<1x4x8x32xf32, #tpu.memory_space<vmem>>, vector<1x4x8x32xf32>,
    return
  }
  func.func @transform_0(%arg0: i32) -> (i32, i32, i32, i32) {
    %c0_i32 = arith.constant 0 : i32
    %c0_i32_0 = arith.constant 0 : i32
    %c0_i32_1 = arith.constant 0 : i32
    %c0_i32_2 = arith.constant 0 : i32
    return %arg0, %c0_i32, %c0_i32_0, %c0_i32_1 : i32, i32, i32, i32
  }
  func.func @transform_1(%arg0: i32) -> (i32, i32) {
    %c0_i32 = arith.constant 0 : i32
    %c0_i32_0 = arith.constant 0 : i32
    %c0_i32_1 = arith.constant 0 : i32
    return %c0_i32, %c0_i32_0 : i32, i32
  }
  func.func @transform_2(%arg0: i32) -> (i32, i32) {
    %c0_i32 = arith.constant 0 : i32
    %c0_i32_0 = arith.constant 0 : i32
    %c0_i32_1 = arith.constant 0 : i32
    return %c0_i32, %c0_i32_0 : i32, i32
  }
  func.func @transform_3(%arg0: i32) -> (i32, i32) {
    %c0_i32 = arith.constant 0 : i32
    %c0_i32_0 = arith.constant 0 : i32
    %c0_i32_1 = arith.constant 0 : i32
    return %c0_i32, %c0_i32_0 : i32, i32
  }
  func.func @transform_4(%arg0: i32) -> (i32, i32) {
    %c0_i32 = arith.constant 0 : i32
    %c0_i32_0 = arith.constant 0 : i32
    %c0_i32_1 = arith.constant 0 : i32
    return %c0_i32, %c0_i32_0 : i32, i32
  }
  func.func @transform_5(%arg0: i32) -> (i32, i32, i32) {
    %c0_i32 = arith.constant 0 : i32
    %c0_i32_0 = arith.constant 0 : i32
    %c0_i32_1 = arith.constant 0 : i32
    %c0_i32_2 = arith.constant 0 : i32
    return %c0_i32, %c0_i32_0, %c0_i32_1 : i32, i32, i32
  }
  func.func @transform_6(%arg0: i32) -> (i32, i32, i32) {
    %c0_i32 = arith.constant 0 : i32
    %c0_i32_0 = arith.constant 0 : i32
    %c0_i32_1 = arith.constant 0 : i32
    %c0_i32_2 = arith.constant 0 : i32
    return %c0_i32, %c0_i32_0, %c0_i32_1 : i32, i32, i32
  }
  func.func @transform_7(%arg0: i32) -> (i32, i32, i32) {
    %c0_i32 = arith.constant 0 : i32
    %c0_i32_0 = arith.constant 0 : i32
    %c0_i32_1 = arith.constant 0 : i32
    %c0_i32_2 = arith.constant 0 : i32
    return %c0_i32, %c0_i32_0, %c0_i32_1 : i32, i32, i32
  }
  func.func @transform_8(%arg0: i32) -> (i32, i32, i32) {
    %c0_i32 = arith.constant 0 : i32
    %c0_i32_0 = arith.constant 0 : i32
    %c0_i32_1 = arith.constant 0 : i32
    %c0_i32_2 = arith.constant 0 : i32
    return %c0_i32, %c0_i32_0, %c0_i32_1 : i32, i32, i32
  }
  func.func @transform_9(%arg0: i32) -> (i32, i32, i32) {
    %c0_i32 = arith.constant 0 : i32
    %c0_i32_0 = arith.constant 0 : i32
    %c0_i32_1 = arith.constant 0 : i32
    %c0_i32_2 = arith.constant 0 : i32
    return %c0_i32, %c0_i32_0, %c0_i32_1 : i32, i32, i32
  }
  func.func @transform_10(%arg0: i32) -> (i32, i32, i32) {
    %c0_i32 = arith.constant 0 : i32
    %c0_i32_0 = arith.constant 0 : i32
    %c0_i32_1 = arith.constant 0 : i32
    %c0_i32_2 = arith.constant 0 : i32
    return %c0_i32, %c0_i32_0, %c0_i32_1 : i32, i32, i32
  }
  func.func @transform_11(%arg0: i32) -> (i32, i32, i32) {
    %c0_i32 = arith.constant 0 : i32
    %c0_i32_0 = arith.constant 0 : i32
    %c0_i32_1 = arith.constant 0 : i32
    %c0_i32_2 = arith.constant 0 : i32
    return %c0_i32, %c0_i32_0, %c0_i32_1 : i32, i32, i32
  }
  func.func @transform_12(%arg0: i32) -> (i32, i32, i32) {
    %c0_i32 = arith.constant 0 : i32
    %c0_i32_0 = arith.constant 0 : i32
    %c0_i32_1 = arith.constant 0 : i32
    %c0_i32_2 = arith.constant 0 : i32
    return %c0_i32, %c0_i32_0, %c0_i32_1 : i32, i32, i32
  }
  func.func @transform_13(%arg0: i32) -> (i32, i32, i32) {
    %c0_i32 = arith.constant 0 : i32
    %c0_i32_0 = arith.constant 0 : i32
    %c0_i32_1 = arith.constant 0 : i32
    %c0_i32_2 = arith.constant 0 : i32
    return %c0_i32, %c0_i32_0, %c0_i32_1 : i32, i32, i32
  }
  func.func @transform_14(%arg0: i32) -> (i32, i32, i32) {
    %c0_i32 = arith.constant 0 : i32
    %c0_i32_0 = arith.constant 0 : i32
    %c0_i32_1 = arith.constant 0 : i32
    %c0_i32_2 = arith.constant 0 : i32
    return %c0_i32, %c0_i32_0, %c0_i32_1 : i32, i32, i32
  }
  func.func @transform_15(%arg0: i32) -> (i32, i32, i32) {
    %c0_i32 = arith.constant 0 : i32
    %c0_i32_0 = arith.constant 0 : i32
    %c0_i32_1 = arith.constant 0 : i32
    %c0_i32_2 = arith.constant 0 : i32
    return %c0_i32, %c0_i32_0, %c0_i32_1 : i32, i32, i32
  }
  func.func @transform_16(%arg0: i32) -> (i32, i32, i32, i32) {
    %c0_i32 = arith.constant 0 : i32
    %c0_i32_0 = arith.constant 0 : i32
    %c0_i32_1 = arith.constant 0 : i32
    %c0_i32_2 = arith.constant 0 : i32
    return %arg0, %c0_i32, %c0_i32_0, %c0_i32_1 : i32, i32, i32, i32
  }
}

</mosaic_0001>

<bundles_post_ra>
// kernel: spatial_forward.1
= control target key start
LH: loop header
LB: loop body
LE: loop exit
PB: predicated region body
PF: predicated region fallthrough
CT: control target
= control target key end

     0   :  { %s4742_s0 = inlined_call_operand.vmem [shape: f32[2,2,8,32], index: 0, kind: input, shape index: {}]   ;;  %s4743_s1 = inlined_call_operand.vmem [shape: f32[32,16], index: 1, kind: input, shape index: {}]   ;;  %s4744_s2 = inlined_call_operand.vmem [shape: f32[32,1], index: 2, kind: input, shape index: {}]   ;;  %s4745_s3 = inlined_call_operand.vmem [shape: f32[1,32], index: 3, kind: input, shape index: {}]   ;;  %s4746_s4 = inlined_call_operand.vmem [shape: f32[1,32], index: 4, kind: input, shape index: {}]   ;;  %s4747_s5 = inlined_call_operand.vmem [shape: f32[3,8,8], index: 5, kind: input, shape index: {}]   ;;  %s4748_s6 = inlined_call_operand.vmem [shape: f32[12,32,32], index: 6, kind: input, shape index: {}]   ;;  %s4749_s7 = inlined_call_operand.vmem [shape: f32[2,1,1], index: 7, kind: input, shape index: {}]   ;;  %s4750_s8 = inlined_call_operand.vmem [shape: f32[2,1,32], index: 8, kind: input, shape index: {}]   ;;  %s4751_s9 = inlined_call_operand.vmem [shape: f32[2,1,32], index: 9, kind: input, shape index: {}]   ;;  %s4752_s10 = inlined_call_operand.vmem [shape: f32[2,1,32], index: 10, kind: input, shape index: {}]   ;;  %s4753_s11 = inlined_call_operand.vmem [shape: f32[2,1,32], index: 11, kind: input, shape index: {}]   ;;  %s4754_s12 = inlined_call_operand.vmem [shape: f32[2,32,128], index: 12, kind: input, shape index: {}]   ;;  %s4755_s13 = inlined_call_operand.vmem [shape: f32[2,1,128], index: 13, kind: input, shape index: {}]   ;;  %s4756_s14 = inlined_call_operand.vmem [shape: f32[2,128,32], index: 14, kind: input, shape index: {}]   ;;  %s4757_s15 = inlined_call_operand.vmem [shape: f32[2,1,32], index: 15, kind: input, shape index: {}]   ;;  %s4758_s16 = inlined_call_operand.hbm [shape: f32[2,4,8,32], index: 16, kind: output, shape index: {}]  }
   0x1   :  { %4765 = sst [smem:[#allocation11_spill]] %s4742_s0 }
   0x2   :  { %21 = vsyncpa [#allocation3], 0 }
   0x3   :  { %23 = vsyncpa [#allocation3 + $0x1], 0  ;;  %s3932_s21 = smov 0   ;;  %s3934_s22 = smov 0  }
   0x4   :  { %s3936_s23 = smov 0   ;;  %s3938_s24 = smov 0  }
   0x5 LB: > { %4766 = sst [smem:[#allocation5_spill]] %s3827_s21  ;;  %s3953_s25 = sadd.s32 4294967295, %s3839_s24   ;;  %s3839_s24 = sphi %s3938_s24, %s4778_s24   ;;  %s3835_s23 = sphi %s3936_s23, %s4780_s23   ;;  %s3831_s22 = sphi %s3934_s22, %s4782_s22   ;;  %s3827_s21 = sphi %s3932_s21, %s4781_s21  }
   0x6   : > { %4767 = sst [smem:[#allocation6_spill]] %s3835_s23  ;;  %s3120_s26 = sadd.s32 4294967294, %s3839_s24  }
   0x7   : > { %4768 = sst [smem:[#allocation7_spill]] %s3839_s24  ;;  %s3957_s27 = sadd.s32 1, %s3839_s24  }
   0x8   : > { %4769 = sst [smem:[#allocation8_spill]] %s3957_s27  ;;  %s377_s28 = sadd.s32 1, %s3835_s23 }
   0x9   : > { %s374_s29 = ssub.s32 %s3839_s24, %s3957_s27  ;;  %p387_p0 = scmp.ne.s32.totalorder %s3835_s23, %s3831_s22 }
   0xa   : > { %p375_p1 = scmp.eq.s32.totalorder %s374_s29, 0  ;;  %p388_p2 = scmp.eq.s32.totalorder %s3953_s25, 1 }
   0xb   : > { %p393_p3 = scmp.ne.s32.totalorder %s3831_s22, %s3827_s21  ;;  %p394_p4 = scmp.eq.s32.totalorder %s3120_s26, 1 }
   0xc   : > { %s3968_s30 = scalar_select %p375_p1, %s3835_s23, %s377_s28  }
   0xd   : > { %p3970_p5 = por %p388_p2, %p387_p0  ;;  %p3974_p6 = por %p394_p4, %p393_p3 }
   0xe   : > { %4770 = sst [smem:[#allocation9_spill]] %s3968_s30  ;;  %p3123_p7 = scmp.ge.s32.totalorder %s3839_s24, 1 }
   0xf   : > { %s4772_s17 = scalar_select %p3974_p6, 1, 0 }
  0x10   : > { %p465_p8 = scmp.lt.s32.totalorder %s3839_s24, 3 }
  0x11   : > { %4773 = sst [smem:[#allocation10_spill]] %s4772_s17 }
  0x12   : > { %p466_p9 = pnand %p3123_p7, %p465_p8 }
  0x13   : > { %p515_p10 = scmp.lt.s32.totalorder (!%p466_p9), %s3953_s25, 1  ;;  %s4774_s26 = sld [smem:[#allocation11_spill]] (!%p466_p9) }
  0x14   : > { %469 = sbr.rel (%p466_p9) target bundleno = 4274 (0x10b2), region = 84  ;;  %s512_s21 = sand.u32 (!%p466_p9), 1, %s3831_s22  }
  0x15   : > { %s3844_s27 = smov (!%p466_p9), [#allocation2]  }
  0x16   : > { %s3783_s17 = sshll.u32 (!%p466_p9), %s3844_s27, 4  ;;  %s3784_s17 = int_to_ptr.vmem [resolvable:$false] %s3783_s17 }
  0x17   : > { %s3785_s18 = scalar_lea.vmem (!%p466_p9), %s3784_s17, 1024 }
  0x19   : > { %v522_v0 = vld [vmem:[%s4743_s1] sm:$0xff]  ;;  %vm550_vm0 = vcmask 130048   ;;  %v3841_v1 = vmov 0   ;;  %v528_v3 = vld [vmem:[%s4744_s2 + $0x10] sm:$0xff]  ;;  %s516_s30 = scalar_select %p515_p10, %s3953_s25, 1  ;;  %v527_v4 = vld [vmem:[%s4744_s2 + $0x8] sm:$0xff] }
  0x1a   : > { %3391 = vmatprep.mubr.msk.f32.mxu0 %vm550_vm0, %v522_v0  ;;  %3707 = vset.pattern.permute.xlu0 %v3841_v1  ;;  %v526_v2 = vld [vmem:[%s4744_s2] sm:$0xff]  ;;  %v529_v5 = vld [vmem:[%s4744_s2 + $0x18] sm:$0xff]  ;;  %v523_v8 = vld [vmem:[%s4743_s1 + $0x8] sm:$0xff]  ;;  %vm650_vm1 = vcmask 261120   ;;  %vm3843_vm2 = vmmov 0   ;;  %vm1126_vm3 = vcmask 64512  }
  0x1b   : > { %532 = vperm.xlu0 %3707, %v526_v2   ;;  %3708 = vset.pattern.permute.xlu1 %v3841_v1  ;;  %s3251_s19 = sshll.u32 %s516_s30, 4  ;;  %v524_v9 = vld [vmem:[%s4743_s1 + $0x10] sm:$0xff]  ;;  %v525_v10 = vld [vmem:[%s4743_s1 + $0x18] sm:$0xff]  ;;  %v3131_v60 = vld [vmem:[%s4745_s3] ss:$0 sm:$0xff] }
  0x1c   : > { %542 = vperm.xlu1 %3708, %v528_v3   ;;  %s519_s24 = scalar_lea.vmem %s4774_s26, %s3251_s19  ;;  %v3132_v63 = vld [vmem:[%s4746_s4] ss:$0 sm:$0xff]  ;;  %s3252_s26 = sshll.u32 %s3953_s25, 9 }
  0x1d   : > { %v521_v6 = vld [vmem:[%s519_s24 + $0x8] sm:$0xff]  ;;  %v520_v7 = vld [vmem:[%s519_s24] sm:$0xff]  ;;  %s3124_s24 = sshll.u32 %s512_s21, 5  ;;  %s4695_s30 = scalar_lea.hbm %s4758_s16, %s3252_s26 }
  0x1e   : > { %3387 = vmatprep.subr.mxu0 %v521_v6  ;;  %s514_s20 = scalar_lea.vmem [#allocation2], %s3124_s24  ;;  %s4702_s24 = scalar_lea.sflag [#allocation3], %s512_s21 }
  0x1f   : > { %537 = vperm.xlu0 %3707, %v527_v4   ;;  %3388 = vmatpush3.msra.mxu0 %v521_v6  ;;  %s3058_s28 = sshll.u32 %s514_s20, 4  ;;  %s4697_s28 = int_to_ptr.vmem [resolvable:$true] %s3058_s28 }
  0x20   : > { %547 = vperm.xlu1 %3708, %v529_v5   ;;  %3389 = vmatprep.subr.mxu0 %v520_v7  ;;  %s3779_s25 = scalar_lea.vmem %s4697_s28, 512  ;;  %p3786_p0 = scmp.lt.s32.totalorder %s4697_s28, %s3784_s17 }
  0x21   : > { %3390 = vmatpush3.msra.mxu0 %v520_v7  ;;  %p3780_p11 = scmp.ne.s32.totalorder %s4697_s28, %s3779_s25  ;;  %p3787_p1 = scmp.lt.s32.totalorder %s3785_s18, %s3779_s25 }
  0x22   : > { %3392 = vmatmul.mubr.msk.f32.vlgmr.msra.gmra.mxu0 %vm550_vm0, %v523_v8 }
  0x23   : > { %3394 = vmatprep.mubr.msk.f32.mxu0 %vm550_vm0, %v524_v9  ;;  %p3781_p12 = pnand %p3780_p11, %p3970_p5  ;;  %p3788_p2 = por %p3787_p1, %p3786_p0 }
  0x25   : > { %p3782_p13 = pneg %p3781_p12 }
  0x26   : > { %3395 = vmatmul.mubr.msk.f32.gmra.mxu0 %vm550_vm0, %v525_v10 }
  0x27   : > { %p3789_p3 = pnand %p3788_p2, %p3782_p13 }
  0x96   : > { %v533_v11 = vpop.permute.xlu0 %532 }
  0x97   : > { %v543_v13 = vpop.permute.xlu1 %542 }
  0x9a   : > { %v538_v12 = vpop.permute.xlu0 %537 }
  0x9b   : > { %v548_v21 = vpop.permute.xlu1 %547 }
  0xe2   : > { %v3393_v14 = vpop.f32.mrf.mxu0 }
  0xe3   : > { %v635_v15 = vadd.f32 %v3393_v14, %v538_v12 }
  0xe4   : > { %v629_v16 = vpop.f32.mrf.mxu0 }
  0xe5   : > { %v630_v17 = vadd.f32 %v629_v16, %v533_v11  ;;  %v654_v18 = vsel %vm650_vm1, %v635_v15, 0.0 }
  0xe6   : > { %655 = vadd.xlane.f32.xlu1 %v654_v18  ;;  %v3396_v19 = vpop.f32.mrf.mxu0 }
  0xe7   : > { %v651_v20 = vsel %vm650_vm1, %v630_v17, 0.0  ;;  %v645_v24 = vadd.f32 %v3396_v19, %v548_v21 }
  0xe8   : > { %v639_v22 = vpop.f32.mrf.mxu0  ;;  %652 = vadd.xlane.f32.xlu0 %v651_v20 }
  0xe9   : > { %v640_v23 = vadd.f32 %v639_v22, %v543_v13  ;;  %v660_v26 = vsel %vm650_vm1, %v645_v24, 0.0 }
  0xeb   : > { %v657_v25 = vsel %vm650_vm1, %v640_v23, 0.0 }
  0xec   : > { %658 = vadd.xlane.f32.xlu0 %v657_v25 }
  0xf0   : > { %661 = vadd.xlane.f32.xlu0 %v660_v26 }
 0x16f   : > { %v656_v27 = vpop.xlane.xlu1 %655 }
 0x170   : > { %v665_v28 = vmul.f32 0.03125, %v656_v27 }
 0x171   : > { %v653_v29 = vpop.xlane.xlu0 %652 }
 0x172   : > { %v669_v30 = vsub.f32 %v635_v15, %v665_v28  ;;  %v664_v31 = vmul.f32 0.03125, %v653_v29 }
 0x174   : > { %v668_v32 = vsub.f32 %v630_v17, %v664_v31  ;;  %v673_v33 = vmul.f32 %v669_v30, %v669_v30 }
 0x175   : > { %v659_v34 = vpop.xlane.xlu0 %658 }
 0x176   : > { %v666_v35 = vmul.f32 0.03125, %v659_v34  ;;  %v679_v36 = vsel %vm650_vm1, %v673_v33, 0.0  ;;  %v672_v37 = vmul.f32 %v668_v32, %v668_v32 }
 0x177   : > { %680 = vadd.xlane.f32.xlu0 %v679_v36 }
 0x178   : > { %v670_v38 = vsub.f32 %v640_v23, %v666_v35  ;;  %v676_v39 = vsel %vm650_vm1, %v672_v37, 0.0 }
 0x179   : > { %677 = vadd.xlane.f32.xlu1 %v676_v39  ;;  %v662_v40 = vpop.xlane.xlu0 %661 }
 0x17a   : > { %v667_v41 = vmul.f32 0.03125, %v662_v40  ;;  %v674_v42 = vmul.f32 %v670_v38, %v670_v38 }
 0x17c   : > { %v671_v43 = vsub.f32 %v645_v24, %v667_v41  ;;  %v682_v44 = vsel %vm650_vm1, %v674_v42, 0.0  ;;  %v3166_v41 = vld [vmem:[%s4749_s7] ss:$0 sm:$0xff]  ;;  %v3842_v42 = vmov 0.0  }
 0x17d   : > { %683 = vadd.xlane.f32.xlu1 %v682_v44  ;;  %3397 = vmatprep.subr.mxu0 %v3842_v42  ;;  %v3148_v44 = vld [vmem:[%s4748_s6 + $0x98] sm:$0xff] }
 0x17e   : > { %v675_v45 = vmul.f32 %v671_v43, %v671_v43  ;;  %3419 = vmatprep.subr.mxu1 %v3842_v42  ;;  %3405 = vmatprep.mubr.msk.f32.mxu0 %vm3843_vm2, %v3842_v42 }
 0x17f   : > { %3420 = vmatpush3.msra.mxu1 %v3148_v44  ;;  %3427 = vmatprep.mubr.msk.f32.mxu1 %vm3843_vm2, %v3842_v42 }
 0x180   : > { %v685_v46 = vsel %vm650_vm1, %v675_v45, 0.0  ;;  %3421 = vmatprep.subr.mxu1 %v3842_v42  ;;  %v3137_v45 = vld [vmem:[%s4748_s6 + $0x70] sm:$0xff] }
 0x181   : > { %686 = vadd.xlane.f32.xlu0 %v685_v46  ;;  %v3147_v46 = vld [vmem:[%s4748_s6 + $0x90] sm:$0xff] }
 0x182   : > { %3422 = vmatpush3.msra.mxu1 %v3147_v46  ;;  %v3143_v46 = vld [vmem:[%s4748_s6 + $0x30] sm:$0xff] }
 0x183   : > { %3423 = vmatprep.subr.mxu1 %v3842_v42 }
 0x200   : > { %v681_v47 = vpop.xlane.xlu0 %680 }
 0x201   : > { %v689_v48 = vmul.f32 0.03125, %v681_v47  ;;  %v3136_v47 = vld [vmem:[%s4748_s6 + $0x68] sm:$0xff] }
 0x202   : > { %v678_v49 = vpop.xlane.xlu1 %677 }
 0x203   : > { %v693_v50 = vadd.f32 1e-05, %v689_v48  ;;  %v688_v51 = vmul.f32 0.03125, %v678_v49  ;;  %v3146_v48 = vld [vmem:[%s4748_s6 + $0x88] sm:$0xff]  ;;  %v3135_v49 = vld [vmem:[%s4748_s6 + $0x60] sm:$0xff] }
 0x204   : > { %3424 = vmatpush3.msra.mxu1 %v3146_v48  ;;  %v3141_v48 = vld [vmem:[%s4748_s6 + $0x20] sm:$0xff] }
 0x205   : > { %3709 = vrsqrt.f32 %v693_v50  ;;  %v692_v52 = vadd.f32 1e-05, %v688_v51  ;;  %v3145_v50 = vld [vmem:[%s4748_s6 + $0x80] sm:$0xff]  ;;  %3425 = vmatprep.subr.mxu1 %v3842_v42 }
 0x206   : > { %v684_v53 = vpop.xlane.xlu1 %683  ;;  %3426 = vmatpush3.msra.mxu1 %v3145_v50 }
 0x207   : > { %3711 = vrsqrt.f32 %v692_v52  ;;  %v690_v54 = vmul.f32 0.03125, %v684_v53  ;;  %3451 = vmatprep.subr.mxu1 %v3842_v42 }
 0x209   : > { %v694_v55 = vadd.f32 1e-05, %v690_v54 }
 0x20a   : > { %v687_v56 = vpop.xlane.xlu0 %686 }
 0x20b   : > { %3713 = vrsqrt.f32 %v694_v55  ;;  %v691_v57 = vmul.f32 0.03125, %v687_v56 }
 0x20d   : > { %v695_v58 = vadd.f32 1e-05, %v691_v57 }
 0x20f   : > { %3715 = vrsqrt.f32 %v695_v58 }
 0x212   : > { %v3710_v59 = vpop.eup %3709 }
 0x213   : > { %v701_v61 = vmul.f32 %v3710_v59, %v669_v30 }
 0x214   : > { %v3712_v62 = vpop.eup %3711 }
 0x215   : > { %v711_v0 = vmul.f32 %v3131_v60, %v701_v61  ;;  %v700_v1 = vmul.f32 %v3712_v62, %v668_v32 }
 0x217   : > { %v721_v2 = vadd.f32 %v3132_v63, %v711_v0  ;;  %v710_v3 = vmul.f32 %v3131_v60, %v700_v1 }
 0x218   : > { %v3714_v4 = vpop.eup %3713 }
 0x219   : > { %v4027_v5 = vmax.f32 %v721_v2, 0.0  ;;  %v720_v6 = vadd.f32 %v3132_v63, %v710_v3  ;;  %v702_v7 = vmul.f32 %v3714_v4, %v670_v38  ;;  %v3133_v4 = vld [vmem:[%s4750_s8] ss:$0 sm:$0xff] }
 0x21b   : > { %v733_v8 = vsel %vm650_vm1, %v4027_v5, 0.0  ;;  %v4031_v9 = vmax.f32 %v720_v6, 0.0  ;;  %v712_v10 = vmul.f32 %v3131_v60, %v702_v7 }
 0x21c   : > { %v3716_v11 = vpop.eup %3715  ;;  %734 = vadd.xlane.f32.xlu0 %v733_v8 }
 0x21d   : > { %v730_v12 = vsel %vm650_vm1, %v4031_v9, 0.0  ;;  %v722_v13 = vadd.f32 %v3132_v63, %v712_v10  ;;  %v703_v14 = vmul.f32 %v3716_v11, %v671_v43  ;;  %v3138_v43 = vld [vmem:[%s4748_s6 + $0x78] sm:$0xff] }
 0x21e   : > { %731 = vadd.xlane.f32.xlu1 %v730_v12  ;;  %3398 = vmatpush3.msra.mxu0 %v3138_v43  ;;  %v3134_v12 = vld [vmem:[%s4751_s9] ss:$0 sm:$0xff] }
 0x21f   : > { %v4035_v15 = vmax.f32 %v722_v13, 0.0  ;;  %v713_v16 = vmul.f32 %v3131_v60, %v703_v14  ;;  %3399 = vmatprep.subr.mxu0 %v3842_v42  ;;  %v3158_v43 = vld [vmem:[%s4748_s6 + $0xa0] sm:$0xff] }
 0x220   : > { %3400 = vmatpush3.msra.mxu0 %v3137_v45  ;;  %v3144_v45 = vld [vmem:[%s4748_s6 + $0x38] sm:$0xff] }
 0x221   : > { %v736_v17 = vsel %vm650_vm1, %v4035_v15, 0.0  ;;  %v723_v18 = vadd.f32 %v3132_v63, %v713_v16  ;;  %3401 = vmatprep.subr.mxu0 %v3842_v42 }
 0x222   : > { %737 = vadd.xlane.f32.xlu1 %v736_v17  ;;  %3402 = vmatpush3.msra.mxu0 %v3136_v47  ;;  %v3142_v47 = vld [vmem:[%s4748_s6 + $0x28] sm:$0xff] }
 0x223   : > { %v4039_v19 = vmax.f32 %v723_v18, 0.0  ;;  %3403 = vmatprep.subr.mxu0 %v3842_v42 }
 0x224   : > { %3404 = vmatpush3.msra.mxu0 %v3135_v49 }
 0x225   : > { %v739_v20 = vsel %vm650_vm1, %v4039_v19, 0.0  ;;  %3408 = vmatprep.subr.mxu0 %v3842_v42 }
 0x226   : > { %740 = vadd.xlane.f32.xlu0 %v739_v20 }
 0x2a5   : > { %v735_v21 = vpop.xlane.xlu0 %734 }
 0x2a6   : > { %v743_v22 = vmul.f32 0.03125, %v735_v21 }
 0x2a7   : > { %v732_v23 = vpop.xlane.xlu1 %731 }
 0x2a8   : > { %v4044_v24 = vsub.f32 %v4027_v5, %v743_v22  ;;  %v742_v25 = vmul.f32 0.03125, %v732_v23 }
 0x2aa   : > { %v4047_v26 = vsub.f32 %v4031_v9, %v742_v25  ;;  %v751_v27 = vmul.f32 %v4044_v24, %v4044_v24 }
 0x2ab   : > { %v738_v28 = vpop.xlane.xlu1 %737 }
 0x2ac   : > { %v744_v29 = vmul.f32 0.03125, %v738_v28  ;;  %v757_v30 = vsel %vm650_vm1, %v751_v27, 0.0  ;;  %v750_v31 = vmul.f32 %v4047_v26, %v4047_v26 }
 0x2ad   : > { %758 = vadd.xlane.f32.xlu0 %v757_v30  ;;  %v3161_v30 = vld [vmem:[%s4748_s6 + $0xb8] sm:$0xff] }
 0x2ae   : > { %v4055_v32 = vsub.f32 %v4035_v15, %v744_v29  ;;  %v754_v33 = vsel %vm650_vm1, %v750_v31, 0.0  ;;  %v821_v29 = vld [vmem:[%s4748_s6 + $0x18] sm:$0xff] }
 0x2af   : > { %755 = vadd.xlane.f32.xlu1 %v754_v33  ;;  %v741_v34 = vpop.xlane.xlu0 %740 }
 0x2b0   : > { %v745_v35 = vmul.f32 0.03125, %v741_v34  ;;  %v752_v36 = vmul.f32 %v4055_v32, %v4055_v32  ;;  %v820_v34 = vld [vmem:[%s4748_s6 + $0x10] sm:$0xff] }
 0x2b2   : > { %v4061_v37 = vsub.f32 %v4039_v19, %v745_v35  ;;  %v760_v38 = vsel %vm650_vm1, %v752_v36, 0.0  ;;  %v3160_v35 = vld [vmem:[%s4748_s6 + $0xb0] sm:$0xff] }
 0x2b3   : > { %761 = vadd.xlane.f32.xlu1 %v760_v38  ;;  %v819_v38 = vld [vmem:[%s4748_s6 + $0x8] sm:$0xff] }
 0x2b4   : > { %v753_v39 = vmul.f32 %v4061_v37, %v4061_v37 }
 0x2b6   : > { %v763_v40 = vsel %vm650_vm1, %v753_v39, 0.0  ;;  %v3159_v39 = vld [vmem:[%s4748_s6 + $0xa8] sm:$0xff] }
 0x2b7   : > { %764 = vadd.xlane.f32.xlu0 %v763_v40 }
 0x2c4   : > { %1506 = vperm.xlu1 %3708, %v3166_v41   ;;  %v818_v41 = vld [vmem:[%s4748_s6] sm:$0xff] }
 0x336   : > { %v759_v51 = vpop.xlane.xlu0 %758 }
 0x337   : > { %v767_v52 = vmul.f32 0.03125, %v759_v51 }
 0x338   : > { %v756_v53 = vpop.xlane.xlu1 %755 }
 0x339   : > { %v771_v54 = vadd.f32 1e-05, %v767_v52  ;;  %v766_v55 = vmul.f32 0.03125, %v756_v53 }
 0x33b   : > { %v770_v56 = vadd.f32 1e-05, %v766_v55  ;;  %3717 = vrsqrt.f32 %v771_v54 }
 0x33c   : > { %v762_v57 = vpop.xlane.xlu1 %761 }
 0x33d   : > { %3719 = vrsqrt.f32 %v770_v56  ;;  %v768_v58 = vmul.f32 0.03125, %v762_v57 }
 0x33f   : > { %v772_v59 = vadd.f32 1e-05, %v768_v58 }
 0x340   : > { %v765_v60 = vpop.xlane.xlu0 %764 }
 0x341   : > { %3721 = vrsqrt.f32 %v772_v59  ;;  %v769_v61 = vmul.f32 0.03125, %v765_v60  ;;  %v4208_v59 = vld [vmem:[%s4747_s5 + $0x8] sm:$0xff] }
 0x343   : > { %v773_v62 = vadd.f32 1e-05, %v769_v61 }
 0x345   : > { %3723 = vrsqrt.f32 %v773_v62  ;;  %v4218_v62 = vld [vmem:[%s4747_s5] sm:$0xff] }
 0x348   : > { %v3718_v63 = vpop.eup %3717 }
 0x349   : > { %v779_v2 = vmul.f32 %v3718_v63, %v4044_v24  ;;  %v3157_v63 = vld [vmem:[%s4748_s6 + $0x58] sm:$0xff] }
 0x34a   : > { %v3720_v0 = vpop.eup %3719 }
 0x34b   : > { %v778_v1 = vmul.f32 %v3720_v0, %v4047_v26  ;;  %v789_v8 = vmul.f32 %v3133_v4, %v779_v2  ;;  %v3156_v0 = vld [vmem:[%s4748_s6 + $0x50] sm:$0xff]  ;;  %v3154_v2 = vld [vmem:[%s4748_s6 + $0x40] sm:$0xff] }
 0x34d   : > { %v788_v6 = vmul.f32 %v3133_v4, %v778_v1  ;;  %v4120_v16 = vadd.f32 %v3134_v12, %v789_v8  ;;  %v3155_v1 = vld [vmem:[%s4748_s6 + $0x48] sm:$0xff] }
 0x34e   : > { %v3722_v3 = vpop.eup %3721 }
 0x34f   : > { %v780_v7 = vmul.f32 %v3722_v3, %v4055_v32  ;;  %v4117_v13 = vadd.f32 %v3134_v12, %v788_v6  ;;  %v812_v22 = vsel %vm650_vm1, %v4120_v16, -inf  ;;  %v803_v31 = vsel %vm650_vm1, %v4120_v16, 0.0 }
 0x351   : > { %v790_v10 = vmul.f32 %v3133_v4, %v780_v7  ;;  %v811_v21 = vsel %vm650_vm1, %v4117_v13, -inf  ;;  %v802_v27 = vsel %vm650_vm1, %v4117_v13, 0.0 }
 0x352   : > { %v3724_v11 = vpop.eup %3723  ;;  %v815_v25 = vmax.f32 %v811_v21, %v812_v22  ;;  %v804_v33 = vadd.f32 %v803_v31, %v802_v27  ;;  %v1507_v22 = vpop.permute.xlu1 %1506 }
 0x353   : > { %v781_v14 = vmul.f32 %v3724_v11, %v4061_v37  ;;  %v4122_v17 = vadd.f32 %v3134_v12, %v790_v10 }
 0x355   : > { %v791_v18 = vmul.f32 %v3133_v4, %v781_v14  ;;  %v813_v23 = vsel %vm650_vm1, %v4122_v17, -inf  ;;  %v805_v32 = vsel %vm650_vm1, %v4122_v17, 0.0 }
 0x356   : > { %v806_v37 = vadd.f32 %v805_v32, %v804_v33 }
 0x357   : > { %v4124_v20 = vadd.f32 %v3134_v12, %v791_v18  ;;  %v4244_v12 = vld [vmem:[%s4747_s5 + $0x10] sm:$0xff] }
 0x359   : > { %v814_v24 = vsel %vm650_vm1, %v4124_v20, -inf  ;;  %v807_v36 = vsel %vm650_vm1, %v4124_v20, 0.0 }
 0x35a   : > { %v816_v26 = vmax.f32 %v813_v23, %v814_v24  ;;  %v808_v40 = vadd.f32 %v807_v36, %v806_v37 }
 0x35c   : > { %v817_v28 = vmax.f32 %v815_v25, %v816_v26  ;;  %v810_v44 = vmul.f32 0.25, %v808_v40 }
 0x35e   : > { %3406 = vmatmul.mubr.msk.f32.vlgmr.msra.gmra.mxu0 %vm650_vm1, %v817_v28  ;;  %3428 = vmatmul.mubr.msk.f32.vlgmr.msra.gmra.mxu1 %vm650_vm1, %v817_v28 }
 0x35f   : > { %3409 = vmatpush3.msra.mxu0 %v821_v29  ;;  %3452 = vmatpush3.msra.mxu1 %v3161_v30 }
 0x360   : > { %3410 = vmatprep.subr.mxu0 %v3842_v42  ;;  %3453 = vmatprep.subr.mxu1 %v3842_v42 }
 0x361   : > { %3411 = vmatpush3.msra.mxu0 %v820_v34  ;;  %3454 = vmatpush3.msra.mxu1 %v3160_v35 }
 0x362   : > { %3412 = vmatprep.subr.mxu0 %v3842_v42  ;;  %3455 = vmatprep.subr.mxu1 %v3842_v42 }
 0x363   : > { %3413 = vmatpush3.msra.mxu0 %v819_v38  ;;  %3456 = vmatpush3.msra.mxu1 %v3159_v39 }
 0x364   : > { %3414 = vmatprep.subr.mxu0 %v3842_v42  ;;  %3457 = vmatprep.subr.mxu1 %v3842_v42 }
 0x365   : > { %3415 = vmatpush3.msra.mxu0 %v818_v41  ;;  %3416 = vmatprep.mubr.msk.f32.mxu0 %vm3843_vm2, %v3842_v42 }
 0x366   : > { %3458 = vmatpush3.msra.mxu1 %v3158_v43  ;;  %3459 = vmatprep.mubr.msk.f32.mxu1 %vm3843_vm2, %v3842_v42 }
 0x367   : > { %3417 = vmatmul.mubr.msk.f32.vlgmr.msra.gmra.mxu0 %vm650_vm1, %v810_v44  ;;  %3430 = vmatprep.subr.mxu0 %v3842_v42 }
 0x368   : > { %3460 = vmatmul.mubr.msk.f32.vlgmr.msra.gmra.mxu1 %vm650_vm1, %v817_v28  ;;  %3431 = vmatpush3.msra.mxu0 %v3144_v45 }
 0x369   : > { %3432 = vmatprep.subr.mxu0 %v3842_v42  ;;  %3438 = vmatprep.mubr.msk.f32.mxu0 %vm3843_vm2, %v3842_v42 }
 0x36a   : > { %3433 = vmatpush3.msra.mxu0 %v3143_v46  ;;  %3473 = vmatprep.subr.mxu1 %v3842_v42 }
 0x36b   : > { %3434 = vmatprep.subr.mxu0 %v3842_v42  ;;  %3475 = vmatprep.mubr.msk.f32.mxu1 %vm3843_vm2, %v3842_v42 }
 0x36c   : > { %3435 = vmatpush3.msra.mxu0 %v3142_v47 }
 0x36d   : > { %3436 = vmatprep.subr.mxu0 %v3842_v42 }
 0x36e   : > { %3437 = vmatpush3.msra.mxu0 %v3141_v48 }
 0x36f   : > { %3439 = vmatmul.mubr.msk.f32.vlgmr.msra.gmra.mxu0 %vm650_vm1, %v810_v44  ;;  %3441 = vmatprep.subr.mxu0 %v3842_v42 }
 0x370   : > { %3443 = vmatprep.mubr.msk.f32.mxu0 %vm3843_vm2, %v3842_v42 }
 0x41e   : > { %v896_v49 = vpop.f32.mrf.mxu0  ;;  %v1050_v50 = vpop.f32.mrf.mxu1 }
 0x420   : > { %v3407_v51 = vpop.f32.mrf.mxu0  ;;  %v3429_v52 = vpop.f32.mrf.mxu1 }
 0x427   : > { %v969_v53 = vpop.f32.mrf.mxu0 }
 0x428   : > { %v1349_v54 = vpop.f32.mrf.mxu1  ;;  %v970_v61 = vadd.f32 %v969_v53, %v896_v49 }
 0x429   : > { %v3418_v55 = vpop.f32.mrf.mxu0 }
 0x42a   : > { %v3461_v56 = vpop.f32.mrf.mxu1  ;;  %v1600_v55 = vld [vmem:[%s4754_s12 + $0x18] sm:$0xff] }
 0x42b   : > { %v1599_v56 = vld [vmem:[%s4754_s12 + $0x10] sm:$0xff] }
 0x42f   : > { %v1120_v57 = vpop.f32.mrf.mxu0 }
 0x430   : > { %v1121_v58 = vadd.f32 %v1120_v57, %v1050_v50  ;;  %v1598_v57 = vld [vmem:[%s4754_s12 + $0x8] sm:$0xff] }
 0x431   : > { %v3440_v60 = vpop.f32.mrf.mxu0 }
 0x432   : > { %3442 = vmatpush3.msra.mxu0 %v1121_v58  ;;  %v1597_v58 = vld [vmem:[%s4754_s12] sm:$0xff] }
 0x433   : > { %3444 = vmatmul.mubr.msk.f32.vlgmr.msra.gmra.mxu0 %vm1126_vm3, %v4208_v59  ;;  %3446 = vmatprep.subr.mxu0 %v3842_v42 }
 0x434   : > { %3447 = vmatpush3.msra.mxu0 %v970_v61  ;;  %3448 = vmatprep.mubr.msk.f32.mxu0 %vm3843_vm2, %v3842_v42 }
 0x435   : > { %3462 = vmatprep.subr.mxu0 %v3842_v42 }
 0x437   : > { %3449 = vmatmul.mubr.msk.f32.vlgmr.msra.gmra.mxu0 %vm1126_vm3, %v4218_v62 }
 0x438   : > { %3463 = vmatpush3.msra.mxu0 %v3157_v63  ;;  %3470 = vmatprep.mubr.msk.f32.mxu0 %vm3843_vm2, %v3842_v42 }
 0x439   : > { %3464 = vmatprep.subr.mxu0 %v3842_v42 }
 0x43a   : > { %3465 = vmatpush3.msra.mxu0 %v3156_v0 }
 0x43b   : > { %3466 = vmatprep.subr.mxu0 %v3842_v42 }
 0x43c   : > { %3467 = vmatpush3.msra.mxu0 %v3155_v1 }
 0x43d   : > { %3468 = vmatprep.subr.mxu0 %v3842_v42 }
 0x43e   : > { %3469 = vmatpush3.msra.mxu0 %v3154_v2 }
 0x43f   : > { %3471 = vmatmul.mubr.msk.f32.vlgmr.msra.gmra.mxu0 %vm650_vm1, %v810_v44  ;;  %3478 = vmatprep.subr.mxu0 %v1600_v55 }
 0x440   : > { %3479 = vmatpush3.msra.mxu0 %v1600_v55 }
 0x441   : > { %3480 = vmatprep.subr.mxu0 %v1599_v56 }
 0x442   : > { %3481 = vmatpush3.msra.mxu0 %v1599_v56 }
 0x443   : > { %3482 = vmatprep.subr.mxu0 %v1598_v57 }
 0x444   : > { %3483 = vmatpush3.msra.mxu0 %v1598_v57 }
 0x445   : > { %3484 = vmatprep.subr.mxu0 %v1597_v58 }
 0x446   : > { %3485 = vmatpush3.msra.mxu0 %v1597_v58 }
 0x447   : > { %3530 = vmatprep.subr.mxu0 %v3842_v42 }
 0x4f3   : > { %v1196_v3 = vpop.f32.mrf.mxu0 }
 0x4f5   : > { %v3445_v4 = vpop.f32.mrf.mxu0 }
 0x4f7   : > { %v1269_v6 = vpop.f32.mrf.mxu0 }
 0x4f8   : > { %v1270_v7 = vadd.f32 %v1269_v6, %v1196_v3 }
 0x4f9   : > { %v3450_v8 = vpop.f32.mrf.mxu0 }
 0x4ff   : > { %v1419_v10 = vpop.f32.mrf.mxu0 }
 0x500   : > { %v1420_v11 = vadd.f32 %v1419_v10, %v1349_v54 }
 0x501   : > { %v3472_v14 = vpop.f32.mrf.mxu0 }
 0x502   : > { %3474 = vmatpush3.msra.mxu1 %v1420_v11  ;;  %v3167_v14 = vld [vmem:[%s4752_s10] ss:$0 sm:$0xff] }
 0x503   : > { %3476 = vmatmul.mubr.msk.f32.vlgmr.msra.gmra.mxu1 %vm1126_vm3, %v4244_v12 }
 0x5c3   : > { %v1494_v18 = vpop.f32.mrf.mxu1 }
 0x5c4   : > { %v1498_v21 = vadd.f32 %v1494_v18, %v1270_v7 }
 0x5c5   : > { %v3477_v23 = vpop.f32.mrf.mxu1 }
 0x5c6   : > { %v1509_v24 = vadd.f32 %v1507_v22, %v1498_v21  ;;  %v3168_v21 = vld [vmem:[%s4753_s11] ss:$0 sm:$0xff] }
 0x5c8   : > { %3725 = vtanh.f32 %v1509_v24 }
 0x5d5   : > { %v3726_v25 = vpop.eup %3725 }
 0x5d6   : > { %v1511_v26 = vmul.f32 %v3726_v25, %v4117_v13  ;;  %v1512_v27 = vmul.f32 %v3726_v25, %v4120_v16  ;;  %v1513_v30 = vmul.f32 %v3726_v25, %v4122_v17  ;;  %v1514_v35 = vmul.f32 %v3726_v25, %v4124_v20 }
 0x5d8   : > { %v1515_v28 = vadd.f32 %v1511_v26, %v4117_v13  ;;  %v1516_v29 = vadd.f32 %v1512_v27, %v4120_v16  ;;  %v1517_v34 = vadd.f32 %v1513_v30, %v4122_v17 }
 0x5da   : > { %v4254_v31 = vadd.f32 %v1515_v28, %v4031_v9  ;;  %v4259_v33 = vadd.f32 %v1516_v29, %v4027_v5  ;;  %v4266_v16 = vadd.f32 %v1517_v34, %v4035_v15  ;;  %v1518_v9 = vadd.f32 %v1514_v35, %v4124_v20 }
 0x5dc   : > { %v1525_v32 = vsel %vm650_vm1, %v4254_v31, 0.0  ;;  %v1528_v13 = vsel %vm650_vm1, %v4259_v33, 0.0  ;;  %v1531_v36 = vsel %vm650_vm1, %v4266_v16, 0.0  ;;  %v4272_v5 = vadd.f32 %v1518_v9, %v4039_v19 }
 0x5dd   : > { %1526 = vadd.xlane.f32.xlu0 %v1525_v32 }
 0x5de   : > { %v1534_v17 = vsel %vm650_vm1, %v4272_v5, 0.0 }
 0x5e1   : > { %1529 = vadd.xlane.f32.xlu0 %v1528_v13 }
 0x5e5   : > { %1532 = vadd.xlane.f32.xlu0 %v1531_v36  ;;  %v1756_v36 = vld [vmem:[%s4756_s14 + $0x78] sm:$0xff] }
 0x5e6   : > { %3492 = vmatprep.subr.mxu1 %v1756_v36 }
 0x5e7   : > { %3493 = vmatpush3.msra.mxu1 %v1756_v36 }
 0x5e9   : > { %1535 = vadd.xlane.f32.xlu0 %v1534_v17  ;;  %v1755_v17 = vld [vmem:[%s4756_s14 + $0x70] sm:$0xff] }
 0x5ea   : > { %3494 = vmatprep.subr.mxu1 %v1755_v17 }
 0x5eb   : > { %3495 = vmatpush3.msra.mxu1 %v1755_v17 }
 0x666   : > { %v1527_v37 = vpop.xlane.xlu0 %1526 }
 0x667   : > { %v1537_v38 = vmul.f32 0.03125, %v1527_v37  ;;  %v1754_v37 = vld [vmem:[%s4756_s14 + $0x68] sm:$0xff] }
 0x668   : > { %3496 = vmatprep.subr.mxu1 %v1754_v37 }
 0x669   : > { %v1541_v39 = vsub.f32 %v4254_v31, %v1537_v38  ;;  %3497 = vmatpush3.msra.mxu1 %v1754_v37  ;;  %v1753_v38 = vld [vmem:[%s4756_s14 + $0x60] sm:$0xff] }
 0x66a   : > { %v1530_v15 = vpop.xlane.xlu0 %1529  ;;  %3498 = vmatprep.subr.mxu1 %v1753_v38 }
 0x66b   : > { %v1538_v40 = vmul.f32 0.03125, %v1530_v15  ;;  %v1545_v41 = vmul.f32 %v1541_v39, %v1541_v39  ;;  %3499 = vmatpush3.msra.mxu1 %v1753_v38  ;;  %v1751_v15 = vld [vmem:[%s4756_s14 + $0x50] sm:$0xff] }
 0x66d   : > { %v1542_v20 = vsub.f32 %v4259_v33, %v1538_v40  ;;  %v1549_v43 = vsel %vm650_vm1, %v1545_v41, 0.0  ;;  %v1750_v40 = vld [vmem:[%s4756_s14 + $0x48] sm:$0xff]  ;;  %v1749_v41 = vld [vmem:[%s4756_s14 + $0x40] sm:$0xff] }
 0x66e   : > { %1550 = vadd.xlane.f32.xlu1 %v1549_v43  ;;  %v1533_v44 = vpop.xlane.xlu0 %1532  ;;  %v1747_v43 = vld [vmem:[%s4756_s14 + $0x30] sm:$0xff] }
 0x66f   : > { %v1539_v19 = vmul.f32 0.03125, %v1533_v44  ;;  %v1546_v45 = vmul.f32 %v1542_v20, %v1542_v20  ;;  %v1746_v44 = vld [vmem:[%s4756_s14 + $0x28] sm:$0xff] }
 0x671   : > { %v1543_v46 = vsub.f32 %v4266_v16, %v1539_v19  ;;  %v1552_v47 = vsel %vm650_vm1, %v1546_v45, 0.0  ;;  %v1745_v19 = vld [vmem:[%s4756_s14 + $0x20] sm:$0xff]  ;;  %v1744_v45 = vld [vmem:[%s4756_s14 + $0x18] sm:$0xff] }
 0x672   : > { %1553 = vadd.xlane.f32.xlu0 %v1552_v47  ;;  %v1536_v48 = vpop.xlane.xlu0 %1535  ;;  %v1742_v47 = vld [vmem:[%s4756_s14 + $0x8] sm:$0xff] }
 0x673   : > { %v1540_v49 = vmul.f32 0.03125, %v1536_v48  ;;  %v1547_v50 = vmul.f32 %v1543_v46, %v1543_v46  ;;  %v1741_v48 = vld [vmem:[%s4756_s14] sm:$0xff] }
 0x675   : > { %v1544_v51 = vsub.f32 %v4272_v5, %v1540_v49  ;;  %v1555_v52 = vsel %vm650_vm1, %v1547_v50, 0.0  ;;  %v3169_v49 = vld [vmem:[%s4755_s13] ss:$0 sm:$0xff] }
 0x676   : > { %1556 = vadd.xlane.f32.xlu0 %v1555_v52 }
 0x677   : > { %v1548_v53 = vmul.f32 %v1544_v51, %v1544_v51 }
 0x679   : > { %v1558_v54 = vsel %vm650_vm1, %v1548_v53, 0.0 }
 0x67a   : > { %1559 = vadd.xlane.f32.xlu0 %v1558_v54 }
 0x6f7   : > { %v1551_v60 = vpop.xlane.xlu1 %1550 }
 0x6f8   : > { %v1561_v61 = vmul.f32 0.03125, %v1551_v60 }
 0x6fa   : > { %v1565_v63 = vadd.f32 1e-05, %v1561_v61 }
 0x6fb   : > { %v1554_v0 = vpop.xlane.xlu0 %1553 }
 0x6fc   : > { %3727 = vrsqrt.f32 %v1565_v63  ;;  %v1562_v1 = vmul.f32 0.03125, %v1554_v0 }
 0x6fe   : > { %v1566_v2 = vadd.f32 1e-05, %v1562_v1 }
 0x6ff   : > { %v1557_v3 = vpop.xlane.xlu0 %1556 }
 0x700   : > { %3729 = vrsqrt.f32 %v1566_v2  ;;  %v1563_v4 = vmul.f32 0.03125, %v1557_v3 }
 0x702   : > { %v1567_v6 = vadd.f32 1e-05, %v1563_v4 }
 0x703   : > { %v1560_v7 = vpop.xlane.xlu0 %1559 }
 0x704   : > { %3731 = vrsqrt.f32 %v1567_v6  ;;  %v1564_v8 = vmul.f32 0.03125, %v1560_v7 }
 0x706   : > { %v1568_v10 = vadd.f32 1e-05, %v1564_v8 }
 0x708   : > { %3733 = vrsqrt.f32 %v1568_v10 }
 0x709   : > { %v3728_v11 = vpop.eup %3727 }
 0x70a   : > { %v1573_v18 = vmul.f32 %v3728_v11, %v1541_v39  ;;  %v1752_v39 = vld [vmem:[%s4756_s14 + $0x58] sm:$0xff] }
 0x70b   : > { %3500 = vmatprep.subr.mxu1 %v1752_v39 }
 0x70c   : > { %v1583_v22 = vmul.f32 %v3167_v14, %v1573_v18  ;;  %3501 = vmatpush3.msra.mxu1 %v1752_v39 }
 0x70d   : > { %v3730_v23 = vpop.eup %3729  ;;  %3502 = vmatprep.subr.mxu1 %v1751_v15 }
 0x70e   : > { %v1574_v24 = vmul.f32 %v3730_v23, %v1542_v20  ;;  %v1593_v25 = vadd.f32 %v3168_v21, %v1583_v22  ;;  %3503 = vmatpush3.msra.mxu1 %v1751_v15  ;;  %v1748_v20 = vld [vmem:[%s4756_s14 + $0x38] sm:$0xff] }
 0x70f   : > { %3504 = vmatprep.subr.mxu1 %v1750_v40 }
 0x710   : > { %3486 = vmatprep.mubr.msk.f32.mxu0 %vm650_vm1, %v1593_v25  ;;  %v1584_v26 = vmul.f32 %v3167_v14, %v1574_v24  ;;  %3505 = vmatpush3.msra.mxu1 %v1750_v40  ;;  %v3174_v40 = vld [vmem:[%s4757_s15] ss:$0 sm:$0xff] }
 0x711   : > { %v3732_v27 = vpop.eup %3731  ;;  %3506 = vmatprep.subr.mxu1 %v1749_v41 }
 0x712   : > { %v1594_v28 = vadd.f32 %v3168_v21, %v1584_v26  ;;  %v1575_v29 = vmul.f32 %v3732_v27, %v1543_v46  ;;  %3507 = vmatpush3.msra.mxu1 %v1749_v41  ;;  %v1743_v46 = vld [vmem:[%s4756_s14 + $0x10] sm:$0xff] }
 0x713   : > { %3508 = vmatprep.subr.mxu1 %v1748_v20 }
 0x714   : > { %3487 = vmatmul.mubr.msk.f32.vlgmr.msra.gmra.mxu0 %vm650_vm1, %v1594_v28  ;;  %v1585_v30 = vmul.f32 %v3167_v14, %v1575_v29  ;;  %3509 = vmatpush3.msra.mxu1 %v1748_v20 }
 0x715   : > { %v3734_v32 = vpop.eup %3733  ;;  %3510 = vmatprep.subr.mxu1 %v1747_v43 }
 0x716   : > { %v1595_v34 = vadd.f32 %v3168_v21, %v1585_v30  ;;  %v1576_v35 = vmul.f32 %v3734_v32, %v1544_v51  ;;  %3511 = vmatpush3.msra.mxu1 %v1747_v43 }
 0x717   : > { %3512 = vmatprep.subr.mxu1 %v1746_v44 }
 0x718   : > { %3489 = vmatprep.mubr.msk.f32.mxu0 %vm650_vm1, %v1595_v34  ;;  %v1586_v13 = vmul.f32 %v3167_v14, %v1576_v35  ;;  %3513 = vmatpush3.msra.mxu1 %v1746_v44 }
 0x719   : > { %3514 = vmatprep.subr.mxu1 %v1745_v19 }
 0x71a   : > { %v1596_v9 = vadd.f32 %v3168_v21, %v1586_v13  ;;  %3515 = vmatpush3.msra.mxu1 %v1745_v19 }
 0x71b   : > { %3516 = vmatprep.subr.mxu1 %v1744_v45 }
 0x71c   : > { %3490 = vmatmul.mubr.msk.f32.gmra.mxu0 %vm650_vm1, %v1596_v9  ;;  %3517 = vmatpush3.msra.mxu1 %v1744_v45 }
 0x71d   : > { %3538 = vmatprep.mubr.msk.f32.mxu0 %vm3843_vm2, %v3842_v42  ;;  %3518 = vmatprep.subr.mxu1 %v1743_v46 }
 0x71e   : > { %3519 = vmatpush3.msra.mxu1 %v1743_v46 }
 0x71f   : > { %3520 = vmatprep.subr.mxu1 %v1742_v47 }
 0x720   : > { %3521 = vmatpush3.msra.mxu1 %v1742_v47 }
 0x721   : > { %3522 = vmatprep.subr.mxu1 %v1741_v48 }
 0x722   : > { %3523 = vmatpush3.msra.mxu1 %v1741_v48 }
 0x723   : > { %3574 = vmatprep.subr.mxu1 %v3842_v42 }
 0x7d4   : > { %v3488_v50 = vpop.f32.mrf.mxu0 }
 0x7d5   : > { %v1692_v51 = vadd.f32 %v3488_v50, %v3169_v49 }
 0x7d6   : > { %v1686_v52 = vpop.f32.mrf.mxu0 }
 0x7d7   : > { %v1710_v53 = vmul.f32 %v1692_v51, %v1692_v51  ;;  %v1687_v54 = vadd.f32 %v3169_v49, %v1686_v52  ;;  %v1706_v30 = vmul.f32 0.5, %v1692_v51 }
 0x7d9   : > { %v1714_v55 = vmul.f32 %v1710_v53, %v1692_v51  ;;  %v1709_v56 = vmul.f32 %v1687_v54, %v1687_v54  ;;  %v1705_v28 = vmul.f32 0.5, %v1687_v54 }
 0x7db   : > { %v1718_v57 = vmul.f32 0.044715, %v1714_v55  ;;  %v1713_v58 = vmul.f32 %v1709_v56, %v1687_v54 }
 0x7dc   : > { %v3491_v60 = vpop.f32.mrf.mxu0 }
 0x7dd   : > { %v1722_v61 = vadd.f32 %v1718_v57, %v1692_v51  ;;  %v1717_v63 = vmul.f32 0.044715, %v1713_v58  ;;  %v1702_v0 = vadd.f32 %v3491_v60, %v3169_v49 }
 0x7de   : > { %v1696_v1 = vpop.f32.mrf.mxu0 }
 0x7df   : > { %v1726_v2 = vmul.f32 0.7978846, %v1722_v61  ;;  %v1721_v3 = vadd.f32 %v1717_v63, %v1687_v54  ;;  %v1712_v4 = vmul.f32 %v1702_v0, %v1702_v0  ;;  %v1697_v6 = vadd.f32 %v3169_v49, %v1696_v1 }
 0x7e0   : > { %v1708_v37 = vmul.f32 0.5, %v1702_v0 }
 0x7e1   : > { %3735 = vtanh.f32 %v1726_v2  ;;  %v1725_v7 = vmul.f32 0.7978846, %v1721_v3  ;;  %v1716_v8 = vmul.f32 %v1712_v4, %v1702_v0  ;;  %v1711_v10 = vmul.f32 %v1697_v6, %v1697_v6 }
 0x7e2   : > { %v1707_v36 = vmul.f32 0.5, %v1697_v6 }
 0x7e3   : > { %v1720_v11 = vmul.f32 0.044715, %v1716_v8  ;;  %v1715_v14 = vmul.f32 %v1711_v10, %v1697_v6  ;;  %3737 = vtanh.f32 %v1725_v7 }
 0x7e5   : > { %v1724_v18 = vadd.f32 %v1720_v11, %v1702_v0  ;;  %v1719_v21 = vmul.f32 0.044715, %v1715_v14  ;;  %v3213_v11 = vld [vmem:[%s4749_s7 + $0x1] ss:$0 sm:$0xff]  ;;  %v3186_v14 = vld [vmem:[%s4748_s6 + $0x138] sm:$0xff] }
 0x7e6   : > { %3531 = vmatpush3.msra.mxu0 %v3186_v14  ;;  %v3193_v14 = vld [vmem:[%s4748_s6 + $0x140] sm:$0xff] }
 0x7e7   : > { %v1728_v22 = vmul.f32 0.7978846, %v1724_v18  ;;  %v1723_v23 = vadd.f32 %v1719_v21, %v1697_v6  ;;  %v3185_v18 = vld [vmem:[%s4748_s6 + $0x130] sm:$0xff]  ;;  %3532 = vmatprep.subr.mxu0 %v3842_v42  ;;  %v3184_v21 = vld [vmem:[%s4748_s6 + $0x128] sm:$0xff] }
 0x7e8   : > { %3533 = vmatpush3.msra.mxu0 %v3185_v18  ;;  %v3192_v18 = vld [vmem:[%s4748_s6 + $0xf8] sm:$0xff] }
 0x7e9   : > { %v1727_v24 = vmul.f32 0.7978846, %v1723_v23  ;;  %3739 = vtanh.f32 %v1728_v22  ;;  %3534 = vmatprep.subr.mxu0 %v3842_v42  ;;  %v3183_v22 = vld [vmem:[%s4748_s6 + $0x120] sm:$0xff] }
 0x7ea   : > { %3535 = vmatpush3.msra.mxu0 %v3184_v21  ;;  %v3191_v21 = vld [vmem:[%s4748_s6 + $0xf0] sm:$0xff] }
 0x7eb   : > { %3741 = vtanh.f32 %v1727_v24  ;;  %3536 = vmatprep.subr.mxu0 %v3842_v42 }
 0x7ec   : > { %3537 = vmatpush3.msra.mxu0 %v3183_v22  ;;  %v3190_v22 = vld [vmem:[%s4748_s6 + $0xe8] sm:$0xff] }
 0x7ed   : > { %3541 = vmatprep.subr.mxu0 %v3842_v42 }
 0x7ee   : > { %v3736_v25 = vpop.eup %3735 }
 0x7ef   : > { %v1734_v27 = vadd.f32 1.0, %v3736_v25 }
 0x7f0   : > { %v3738_v26 = vpop.eup %3737 }
 0x7f1   : > { %v1733_v29 = vadd.f32 1.0, %v3738_v26  ;;  %v1738_v34 = vmul.f32 %v1734_v27, %v1706_v30 }
 0x7f3   : > { %v1737_v32 = vmul.f32 %v1733_v29, %v1705_v28 }
 0x7f5   : > { %3524 = vmatprep.mubr.f32.mxu1 %v1737_v32 }
 0x7f6   : > { %v3740_v35 = vpop.eup %3739  ;;  %3525 = vmatmul.mubr.f32.vlgmr.msra.gmra.mxu1 %v1738_v34 }
 0x7f7   : > { %v1736_v9 = vadd.f32 1.0, %v3740_v35 }
 0x7f8   : > { %v3742_v13 = vpop.eup %3741 }
 0x7f9   : > { %v1735_v17 = vadd.f32 1.0, %v3742_v13  ;;  %v1740_v39 = vmul.f32 %v1736_v9, %v1708_v37 }
 0x7fb   : > { %v1739_v38 = vmul.f32 %v1735_v17, %v1707_v36 }
 0x7fd   : > { %3527 = vmatprep.mubr.f32.mxu1 %v1739_v38 }
 0x7fe   : > { %3528 = vmatmul.mubr.f32.gmra.mxu1 %v1740_v39  ;;  %v3177_v39 = vld [vmem:[%s4750_s8 + $0x1] ss:$0 sm:$0xff] }
 0x7ff   : > { %3576 = vmatprep.mubr.msk.f32.mxu1 %vm3843_vm2, %v3842_v42 }
 0x8b6   : > { %v3526_v15 = vpop.f32.mrf.mxu1 }
 0x8b7   : > { %v1843_v41 = vadd.f32 %v3526_v15, %v4259_v33 }
 0x8b8   : > { %v1823_v20 = vpop.f32.mrf.mxu1 }
 0x8b9   : > { %v4367_v43 = vadd.f32 %v3174_v40, %v1843_v41  ;;  %v1842_v44 = vadd.f32 %v1823_v20, %v4254_v31 }
 0x8bb   : > { %v4370_v19 = vadd.f32 %v3174_v40, %v1842_v44  ;;  %v1864_v45 = vsel %vm650_vm1, %v4367_v43, 0.0 }
 0x8bc   : > { %1865 = vadd.xlane.f32.xlu0 %v1864_v45  ;;  %v3178_v45 = vld [vmem:[%s4751_s9 + $0x1] ss:$0 sm:$0xff] }
 0x8bd   : > { %v1861_v47 = vsel %vm650_vm1, %v4370_v19, 0.0 }
 0x8be   : > { %v3529_v46 = vpop.f32.mrf.mxu1 }
 0x8bf   : > { %v1845_v49 = vadd.f32 %v3529_v46, %v4272_v5 }
 0x8c0   : > { %1862 = vadd.xlane.f32.xlu0 %v1861_v47  ;;  %v1833_v48 = vpop.f32.mrf.mxu1 }
 0x8c1   : > { %v1844_v33 = vadd.f32 %v1833_v48, %v4266_v16  ;;  %v4380_v51 = vadd.f32 %v3174_v40, %v1845_v49 }
 0x8c3   : > { %v4378_v50 = vadd.f32 %v3174_v40, %v1844_v33  ;;  %v1870_v52 = vsel %vm650_vm1, %v4380_v51, 0.0 }
 0x8c5   : > { %v1867_v31 = vsel %vm650_vm1, %v4378_v50, 0.0 }
 0x8c6   : > { %1868 = vadd.xlane.f32.xlu0 %v1867_v31 }
 0x8ca   : > { %1871 = vadd.xlane.f32.xlu0 %v1870_v52 }
 0x945   : > { %v1866_v53 = vpop.xlane.xlu0 %1865 }
 0x946   : > { %v1874_v54 = vmul.f32 0.03125, %v1866_v53 }
 0x948   : > { %v1878_v55 = vsub.f32 %v4367_v43, %v1874_v54 }
 0x949   : > { %v1863_v56 = vpop.xlane.xlu0 %1862 }
 0x94a   : > { %v1873_v5 = vmul.f32 0.03125, %v1863_v56  ;;  %v1882_v57 = vmul.f32 %v1878_v55, %v1878_v55 }
 0x94c   : > { %v1877_v16 = vsub.f32 %v4370_v19, %v1873_v5  ;;  %v1888_v58 = vsel %vm650_vm1, %v1882_v57, 0.0 }
 0x94d   : > { %1889 = vadd.xlane.f32.xlu0 %v1888_v58 }
 0x94e   : > { %v1881_v60 = vmul.f32 %v1877_v16, %v1877_v16 }
 0x94f   : > { %v1869_v61 = vpop.xlane.xlu0 %1868 }
 0x950   : > { %v1875_v63 = vmul.f32 0.03125, %v1869_v61  ;;  %v1885_v0 = vsel %vm650_vm1, %v1881_v60, 0.0  ;;  %v3182_v61 = vld [vmem:[%s4748_s6 + $0xd8] sm:$0xff] }
 0x951   : > { %1886 = vadd.xlane.f32.xlu0 %v1885_v0 }
 0x952   : > { %v1879_v1 = vsub.f32 %v4378_v50, %v1875_v63 }
 0x953   : > { %v1872_v2 = vpop.xlane.xlu0 %1871 }
 0x954   : > { %v1876_v3 = vmul.f32 0.03125, %v1872_v2  ;;  %v1883_v4 = vmul.f32 %v1879_v1, %v1879_v1 }
 0x956   : > { %v1880_v6 = vsub.f32 %v4380_v51, %v1876_v3  ;;  %v1891_v7 = vsel %vm650_vm1, %v1883_v4, 0.0  ;;  %v3180_v3 = vld [vmem:[%s4748_s6 + $0xc8] sm:$0xff] }
 0x957   : > { %1892 = vadd.xlane.f32.xlu1 %v1891_v7 }
 0x958   : > { %v1884_v8 = vmul.f32 %v1880_v6, %v1880_v6 }
 0x95a   : > { %v1894_v10 = vsel %vm650_vm1, %v1884_v8, 0.0  ;;  %v3196_v8 = vld [vmem:[%s4748_s6 + $0x158] sm:$0xff] }
 0x95b   : > { %1895 = vadd.xlane.f32.xlu0 %v1894_v10  ;;  %v3195_v10 = vld [vmem:[%s4748_s6 + $0x150] sm:$0xff] }
 0x968   : > { %2623 = vperm.xlu1 %3708, %v3213_v11   ;;  %v3194_v11 = vld [vmem:[%s4748_s6 + $0x148] sm:$0xff] }
 0x9d6   : > { %v1890_v23 = vpop.xlane.xlu0 %1889 }
 0x9d7   : > { %v1898_v24 = vmul.f32 0.03125, %v1890_v23  ;;  %v3189_v23 = vld [vmem:[%s4748_s6 + $0xe0] sm:$0xff] }
 0x9d9   : > { %v1902_v27 = vadd.f32 1e-05, %v1898_v24 }
 0x9da   : > { %v1887_v25 = vpop.xlane.xlu0 %1886 }
 0x9db   : > { %v1897_v26 = vmul.f32 0.03125, %v1887_v25 }
 0x9dd   : > { %v1901_v28 = vadd.f32 1e-05, %v1897_v26 }
 0x9df   : > { %3743 = vrsqrt.f32 %v1901_v28 }
 0x9e0   : > { %v1893_v29 = vpop.xlane.xlu1 %1892  ;;  %3745 = vrsqrt.f32 %v1902_v27 }
 0x9e1   : > { %v1899_v30 = vmul.f32 0.03125, %v1893_v29  ;;  %v3204_v29 = vld [vmem:[%s4748_s6 + $0x118] sm:$0xff] }
 0x9e3   : > { %v1903_v32 = vadd.f32 1e-05, %v1899_v30  ;;  %v3203_v30 = vld [vmem:[%s4748_s6 + $0x110] sm:$0xff] }
 0x9e4   : > { %v1896_v34 = vpop.xlane.xlu0 %1895 }
 0x9e5   : > { %3747 = vrsqrt.f32 %v1903_v32  ;;  %v1900_v35 = vmul.f32 0.03125, %v1896_v34  ;;  %v3202_v32 = vld [vmem:[%s4748_s6 + $0x108] sm:$0xff] }
 0x9e7   : > { %v1904_v13 = vadd.f32 1e-05, %v1900_v35 }
 0x9e9   : > { %3749 = vrsqrt.f32 %v1904_v13 }
 0x9ec   : > { %v3744_v9 = vpop.eup %3743 }
 0x9ed   : > { %v3746_v36 = vpop.eup %3745  ;;  %v1909_v17 = vmul.f32 %v3744_v9, %v1877_v16 }
 0x9ee   : > { %v1910_v37 = vmul.f32 %v3746_v36, %v1878_v55 }
 0x9ef   : > { %v1919_v15 = vmul.f32 %v3177_v39, %v1909_v17  ;;  %v3208_v17 = vld [vmem:[%s4748_s6 + $0x178] sm:$0xff] }
 0x9f0   : > { %v1920_v41 = vmul.f32 %v3177_v39, %v1910_v37  ;;  %v3207_v37 = vld [vmem:[%s4748_s6 + $0x170] sm:$0xff] }
 0x9f1   : > { %v4419_v46 = vadd.f32 %v3178_v45, %v1919_v15 }
 0x9f2   : > { %v3748_v38 = vpop.eup %3747  ;;  %v4421_v48 = vadd.f32 %v3178_v45, %v1920_v41 }
 0x9f3   : > { %v1911_v40 = vmul.f32 %v3748_v38, %v1879_v1  ;;  %v1941_v52 = vsel %vm650_vm1, %v4419_v46, -inf  ;;  %v1933_v56 = vsel %vm650_vm1, %v4419_v46, 0.0  ;;  %v3181_v1 = vld [vmem:[%s4748_s6 + $0xd0] sm:$0xff]  ;;  %v3206_v38 = vld [vmem:[%s4748_s6 + $0x168] sm:$0xff] }
 0x9f4   : > { %v1942_v53 = vsel %vm650_vm1, %v4421_v48, -inf  ;;  %v1934_v16 = vsel %vm650_vm1, %v4421_v48, 0.0 }
 0x9f5   : > { %v1921_v20 = vmul.f32 %v3177_v39, %v1911_v40  ;;  %v1945_v5 = vmax.f32 %v1941_v52, %v1942_v53  ;;  %v1935_v63 = vadd.f32 %v1934_v16, %v1933_v56 }
 0x9f6   : > { %v3750_v44 = vpop.eup %3749 }
 0x9f7   : > { %v1912_v47 = vmul.f32 %v3750_v44, %v1880_v6  ;;  %v4423_v49 = vadd.f32 %v3178_v45, %v1921_v20  ;;  %v3179_v6 = vld [vmem:[%s4748_s6 + $0xc0] sm:$0xff] }
 0x9f9   : > { %v1922_v33 = vmul.f32 %v3177_v39, %v1912_v47  ;;  %v1943_v54 = vsel %vm650_vm1, %v4423_v49, -inf  ;;  %v1936_v58 = vsel %vm650_vm1, %v4423_v49, 0.0 }
 0x9fa   : > { %v1937_v2 = vadd.f32 %v1936_v58, %v1935_v63 }
 0x9fb   : > { %v4425_v31 = vadd.f32 %v3178_v45, %v1922_v33 }
 0x9fd   : > { %v1944_v55 = vsel %vm650_vm1, %v4425_v31, -inf  ;;  %v1938_v0 = vsel %vm650_vm1, %v4425_v31, 0.0 }
 0x9fe   : > { %v1946_v57 = vmax.f32 %v1943_v54, %v1944_v55  ;;  %v1939_v4 = vadd.f32 %v1938_v0, %v1937_v2  ;;  %v2624_v55 = vpop.permute.xlu1 %2623 }
 0xa00   : > { %v4441_v60 = vmax.f32 %v1945_v5, %v1946_v57  ;;  %v1940_v7 = vmul.f32 0.25, %v1939_v4 }
 0xa02   : > { %3539 = vmatmul.mubr.msk.f32.vlgmr.msra.gmra.mxu0 %vm650_vm1, %v4441_v60 }
 0xa03   : > { %3542 = vmatpush3.msra.mxu0 %v3182_v61  ;;  %3549 = vmatprep.mubr.msk.f32.mxu0 %vm3843_vm2, %v3842_v42 }
 0xa04   : > { %3543 = vmatprep.subr.mxu0 %v3842_v42 }
 0xa05   : > { %3544 = vmatpush3.msra.mxu0 %v3181_v1 }
 0xa06   : > { %3545 = vmatprep.subr.mxu0 %v3842_v42 }
 0xa07   : > { %3546 = vmatpush3.msra.mxu0 %v3180_v3 }
 0xa08   : > { %3547 = vmatprep.subr.mxu0 %v3842_v42 }
 0xa09   : > { %3548 = vmatpush3.msra.mxu0 %v3179_v6 }
 0xa0a   : > { %3550 = vmatmul.mubr.msk.f32.vlgmr.msra.gmra.mxu0 %vm650_vm1, %v1940_v7  ;;  %3552 = vmatprep.subr.mxu0 %v3842_v42 }
 0xa0b   : > { %3553 = vmatpush3.msra.mxu0 %v3196_v8  ;;  %3560 = vmatprep.mubr.msk.f32.mxu0 %vm3843_vm2, %v3842_v42 }
 0xa0c   : > { %3554 = vmatprep.subr.mxu0 %v3842_v42 }
 0xa0d   : > { %3555 = vmatpush3.msra.mxu0 %v3195_v10 }
 0xa0e   : > { %3556 = vmatprep.subr.mxu0 %v3842_v42 }
 0xa0f   : > { %3557 = vmatpush3.msra.mxu0 %v3194_v11 }
 0xa10   : > { %3558 = vmatprep.subr.mxu0 %v3842_v42 }
 0xa11   : > { %3559 = vmatpush3.msra.mxu0 %v3193_v14 }
 0xa12   : > { %3561 = vmatmul.mubr.msk.f32.vlgmr.msra.gmra.mxu0 %vm650_vm1, %v4441_v60  ;;  %3563 = vmatprep.subr.mxu0 %v3842_v42 }
 0xa13   : > { %3564 = vmatpush3.msra.mxu0 %v3192_v18  ;;  %3571 = vmatprep.mubr.msk.f32.mxu0 %vm3843_vm2, %v3842_v42 }
 0xa14   : > { %3565 = vmatprep.subr.mxu0 %v3842_v42 }
 0xa15   : > { %3566 = vmatpush3.msra.mxu0 %v3191_v21 }
 0xa16   : > { %3567 = vmatprep.subr.mxu0 %v3842_v42 }
 0xa17   : > { %3568 = vmatpush3.msra.mxu0 %v3190_v22 }
 0xa18   : > { %3569 = vmatprep.subr.mxu0 %v3842_v42 }
 0xa19   : > { %3570 = vmatpush3.msra.mxu0 %v3189_v23 }
 0xa1a   : > { %3572 = vmatmul.mubr.msk.f32.vlgmr.msra.gmra.mxu0 %vm650_vm1, %v1940_v7  ;;  %3579 = vmatprep.subr.mxu0 %v3842_v42 }
 0xa1b   : > { %3581 = vmatprep.mubr.msk.f32.mxu0 %vm3843_vm2, %v3842_v42 }
 0xac2   : > { %v2027_v24 = vpop.f32.mrf.mxu0 }
 0xac4   : > { %v3540_v25 = vpop.f32.mrf.mxu0 }
 0xaca   : > { %v2100_v26 = vpop.f32.mrf.mxu0 }
 0xacb   : > { %v2101_v27 = vadd.f32 %v2100_v26, %v2027_v24 }
 0xacc   : > { %v3551_v28 = vpop.f32.mrf.mxu0 }
 0xacd   : > { %3580 = vmatpush3.msra.mxu0 %v2101_v27 }
 0xace   : > { %3595 = vmatprep.subr.mxu0 %v3842_v42  ;;  %3582 = vmatmul.mubr.msk.f32.vlgmr.msra.gmra.mxu0 %vm1126_vm3, %v4218_v62  ;;  %v3201_v62 = vld [vmem:[%s4748_s6 + $0x100] sm:$0xff] }
 0xacf   : > { %3596 = vmatpush3.msra.mxu0 %v3204_v29  ;;  %3603 = vmatprep.mubr.msk.f32.mxu0 %vm3843_vm2, %v3842_v42 }
 0xad0   : > { %3597 = vmatprep.subr.mxu0 %v3842_v42 }
 0xad1   : > { %3598 = vmatpush3.msra.mxu0 %v3203_v30  ;;  %v3221_v30 = vld [vmem:[%s4754_s12 + $0x38] sm:$0xff] }
 0xad2   : > { %v2180_v34 = vpop.f32.mrf.mxu0  ;;  %3599 = vmatprep.subr.mxu0 %v3842_v42 }
 0xad3   : > { %3600 = vmatpush3.msra.mxu0 %v3202_v32  ;;  %v3220_v32 = vld [vmem:[%s4754_s12 + $0x30] sm:$0xff] }
 0xad4   : > { %v3562_v35 = vpop.f32.mrf.mxu0  ;;  %3601 = vmatprep.subr.mxu0 %v3842_v42 }
 0xad5   : > { %3602 = vmatpush3.msra.mxu0 %v3201_v62  ;;  %v3218_v62 = vld [vmem:[%s4754_s12 + $0x20] sm:$0xff] }
 0xad6   : > { %3604 = vmatmul.mubr.msk.f32.vlgmr.msra.gmra.mxu0 %vm650_vm1, %v1940_v7  ;;  %3611 = vmatprep.subr.mxu0 %v3221_v30 }
 0xad7   : > { %3612 = vmatpush3.msra.mxu0 %v3221_v30 }
 0xad8   : > { %3613 = vmatprep.subr.mxu0 %v3220_v32 }
 0xad9   : > { %3614 = vmatpush3.msra.mxu0 %v3220_v32 }
 0xada   : > { %v2250_v13 = vpop.f32.mrf.mxu0 }
 0xadb   : > { %v2251_v9 = vadd.f32 %v2250_v13, %v2180_v34  ;;  %v3219_v34 = vld [vmem:[%s4754_s12 + $0x28] sm:$0xff] }
 0xadc   : > { %v3573_v36 = vpop.f32.mrf.mxu0  ;;  %3615 = vmatprep.subr.mxu0 %v3219_v34 }
 0xadd   : > { %3575 = vmatpush3.msra.mxu1 %v2251_v9  ;;  %3616 = vmatpush3.msra.mxu0 %v3219_v34 }
 0xade   : > { %3584 = vmatprep.subr.mxu1 %v3842_v42  ;;  %3577 = vmatmul.mubr.msk.f32.vlgmr.msra.gmra.mxu1 %vm1126_vm3, %v4208_v59  ;;  %v3205_v59 = vld [vmem:[%s4748_s6 + $0x160] sm:$0xff] }
 0xadf   : > { %3585 = vmatpush3.msra.mxu1 %v3208_v17  ;;  %3592 = vmatprep.mubr.msk.f32.mxu1 %vm3843_vm2, %v3842_v42 }
 0xae0   : > { %3586 = vmatprep.subr.mxu1 %v3842_v42  ;;  %3617 = vmatprep.subr.mxu0 %v3218_v62 }
 0xae1   : > { %3587 = vmatpush3.msra.mxu1 %v3207_v37  ;;  %3618 = vmatpush3.msra.mxu0 %v3218_v62 }
 0xae2   : > { %3588 = vmatprep.subr.mxu1 %v3842_v42 }
 0xae3   : > { %3589 = vmatpush3.msra.mxu1 %v3206_v38 }
 0xae4   : > { %3590 = vmatprep.subr.mxu1 %v3842_v42 }
 0xae5   : > { %3591 = vmatpush3.msra.mxu1 %v3205_v59 }
 0xae6   : > { %3593 = vmatmul.mubr.msk.f32.vlgmr.msra.gmra.mxu1 %vm650_vm1, %v4441_v60  ;;  %3606 = vmatprep.subr.mxu1 %v3842_v42 }
 0xae7   : > { %3608 = vmatprep.mubr.msk.f32.mxu1 %vm3843_vm2, %v3842_v42 }
 0xb8e   : > { %v2390_v39 = vpop.f32.mrf.mxu0 }
 0xb90   : > { %v3583_v15 = vpop.f32.mrf.mxu0 }
 0xb96   : > { %v2540_v40 = vpop.f32.mrf.mxu0 }
 0xb98   : > { %v3605_v41 = vpop.f32.mrf.mxu0 }
 0xb9e   : > { %v2320_v20 = vpop.f32.mrf.mxu1 }
 0xb9f   : > { %v2391_v44 = vadd.f32 %v2390_v39, %v2320_v20 }
 0xba0   : > { %v3578_v45 = vpop.f32.mrf.mxu1 }
 0xba6   : > { %v2470_v47 = vpop.f32.mrf.mxu1 }
 0xba7   : > { %v2541_v33 = vadd.f32 %v2540_v40, %v2470_v47  ;;  %v3217_v47 = vld [vmem:[%s4753_s11 + $0x1] ss:$0 sm:$0xff] }
 0xba8   : > { %v3594_v52 = vpop.f32.mrf.mxu1 }
 0xba9   : > { %3607 = vmatpush3.msra.mxu1 %v2541_v33 }
 0xbaa   : > { %3609 = vmatmul.mubr.msk.f32.vlgmr.msra.gmra.mxu1 %vm1126_vm3, %v4244_v12 }
 0xc6a   : > { %v2610_v53 = vpop.f32.mrf.mxu1 }
 0xc6b   : > { %v2614_v54 = vadd.f32 %v2610_v53, %v2391_v44  ;;  %v3216_v44 = vld [vmem:[%s4752_s10 + $0x1] ss:$0 sm:$0xff] }
 0xc6c   : > { %v3610_v56 = vpop.f32.mrf.mxu1 }
 0xc6d   : > { %v2626_v5 = vadd.f32 %v2624_v55, %v2614_v54 }
 0xc6f   : > { %3751 = vtanh.f32 %v2626_v5 }
 0xc7c   : > { %v3752_v42 = vpop.eup %3751 }
 0xc7d   : > { %v2628_v57 = vmul.f32 %v3752_v42, %v4419_v46  ;;  %v2629_v16 = vmul.f32 %v3752_v42, %v4421_v48  ;;  %v2630_v61 = vmul.f32 %v3752_v42, %v4423_v49  ;;  %v2631_v2 = vmul.f32 %v3752_v42, %v4425_v31 }
 0xc7f   : > { %v2632_v58 = vadd.f32 %v2628_v57, %v4419_v46  ;;  %v2633_v60 = vadd.f32 %v2629_v16, %v4421_v48  ;;  %v2634_v1 = vadd.f32 %v2630_v61, %v4423_v49 }
 0xc81   : > { %v4561_v63 = vadd.f32 %v2632_v58, %v4370_v19  ;;  %v4566_v0 = vadd.f32 %v2633_v60, %v4367_v43  ;;  %v4573_v48 = vadd.f32 %v2634_v1, %v4378_v50  ;;  %v2635_v19 = vadd.f32 %v2631_v2, %v4425_v31  ;;  %v3243_v1 = vld [vmem:[%s4756_s14 + $0xf8] sm:$0xff]  ;;  %v3242_v2 = vld [vmem:[%s4756_s14 + $0xf0] sm:$0xff] }
 0xc82   : > { %3625 = vmatprep.subr.mxu1 %v3243_v1 }
 0xc83   : > { %v2644_v12 = vsel %vm650_vm1, %v4561_v63, 0.0  ;;  %v2647_v46 = vsel %vm650_vm1, %v4566_v0, 0.0  ;;  %v2650_v3 = vsel %vm650_vm1, %v4573_v48, 0.0  ;;  %v4579_v43 = vadd.f32 %v2635_v19, %v4380_v51  ;;  %3626 = vmatpush3.msra.mxu1 %v3243_v1  ;;  %v3240_v19 = vld [vmem:[%s4756_s14 + $0xe0] sm:$0xff] }
 0xc84   : > { %2645 = vadd.xlane.f32.xlu0 %v2644_v12  ;;  %3627 = vmatprep.subr.mxu1 %v3242_v2 }
 0xc85   : > { %v2653_v49 = vsel %vm650_vm1, %v4579_v43, 0.0  ;;  %3628 = vmatpush3.msra.mxu1 %v3242_v2 }
 0xc88   : > { %2648 = vadd.xlane.f32.xlu0 %v2647_v46  ;;  %v3241_v46 = vld [vmem:[%s4756_s14 + $0xe8] sm:$0xff] }
 0xc89   : > { %3629 = vmatprep.subr.mxu1 %v3241_v46 }
 0xc8a   : > { %3630 = vmatpush3.msra.mxu1 %v3241_v46  ;;  %v3245_v46 = vld [vmem:[%s4757_s15 + $0x1] ss:$0 sm:$0xff] }
 0xc8b   : > { %3631 = vmatprep.subr.mxu1 %v3240_v19 }
 0xc8c   : > { %2651 = vadd.xlane.f32.xlu0 %v2650_v3  ;;  %3632 = vmatpush3.msra.mxu1 %v3240_v19  ;;  %v3239_v3 = vld [vmem:[%s4756_s14 + $0xd8] sm:$0xff] }
 0xc8d   : > { %3633 = vmatprep.subr.mxu1 %v3239_v3 }
 0xc8e   : > { %3634 = vmatpush3.msra.mxu1 %v3239_v3 }
 0xc90   : > { %2654 = vadd.xlane.f32.xlu0 %v2653_v49  ;;  %v3238_v49 = vld [vmem:[%s4756_s14 + $0xd0] sm:$0xff] }
 0xc91   : > { %3635 = vmatprep.subr.mxu1 %v3238_v49 }
 0xc92   : > { %3636 = vmatpush3.msra.mxu1 %v3238_v49 }
 0xd0d   : > { %v2646_v4 = vpop.xlane.xlu0 %2645 }
 0xd0e   : > { %v2656_v6 = vmul.f32 0.03125, %v2646_v4  ;;  %v3237_v4 = vld [vmem:[%s4756_s14 + $0xc8] sm:$0xff] }
 0xd0f   : > { %3637 = vmatprep.subr.mxu1 %v3237_v4 }
 0xd10   : > { %v2660_v7 = vsub.f32 %v4561_v63, %v2656_v6  ;;  %3638 = vmatpush3.msra.mxu1 %v3237_v4  ;;  %v3236_v6 = vld [vmem:[%s4756_s14 + $0xc0] sm:$0xff] }
 0xd11   : > { %v2649_v50 = vpop.xlane.xlu0 %2648  ;;  %3639 = vmatprep.subr.mxu1 %v3236_v6 }
 0xd12   : > { %v2657_v8 = vmul.f32 0.03125, %v2649_v50  ;;  %v2664_v10 = vmul.f32 %v2660_v7, %v2660_v7  ;;  %3640 = vmatpush3.msra.mxu1 %v3236_v6  ;;  %v3234_v50 = vld [vmem:[%s4756_s14 + $0xb0] sm:$0xff] }
 0xd14   : > { %v2661_v31 = vsub.f32 %v4566_v0, %v2657_v8  ;;  %v2668_v11 = vsel %vm650_vm1, %v2664_v10, 0.0  ;;  %v3233_v8 = vld [vmem:[%s4756_s14 + $0xa8] sm:$0xff]  ;;  %v3232_v10 = vld [vmem:[%s4756_s14 + $0xa0] sm:$0xff] }
 0xd15   : > { %2669 = vadd.xlane.f32.xlu1 %v2668_v11  ;;  %v2652_v14 = vpop.xlane.xlu0 %2651  ;;  %v3230_v11 = vld [vmem:[%s4756_s14 + $0x90] sm:$0xff] }
 0xd16   : > { %v2658_v51 = vmul.f32 0.03125, %v2652_v14  ;;  %v2665_v18 = vmul.f32 %v2661_v31, %v2661_v31  ;;  %v3229_v14 = vld [vmem:[%s4756_s14 + $0x88] sm:$0xff] }
 0xd18   : > { %v2662_v21 = vsub.f32 %v4573_v48, %v2658_v51  ;;  %v2671_v22 = vsel %vm650_vm1, %v2665_v18, 0.0  ;;  %v3228_v51 = vld [vmem:[%s4756_s14 + $0x80] sm:$0xff] }
 0xd19   : > { %2672 = vadd.xlane.f32.xlu0 %v2671_v22  ;;  %v2655_v23 = vpop.xlane.xlu0 %2654  ;;  %v3223_v18 = vld [vmem:[%s4755_s13 + $0x1] ss:$0 sm:$0xff] }
 0xd1a   : > { %v2659_v24 = vmul.f32 0.03125, %v2655_v23  ;;  %v2666_v25 = vmul.f32 %v2662_v21, %v2662_v21 }
 0xd1c   : > { %v2663_v26 = vsub.f32 %v4579_v43, %v2659_v24  ;;  %v2674_v27 = vsel %vm650_vm1, %v2666_v25, 0.0 }
 0xd1d   : > { %2675 = vadd.xlane.f32.xlu0 %v2674_v27 }
 0xd1e   : > { %v2667_v28 = vmul.f32 %v2663_v26, %v2663_v26 }
 0xd20   : > { %v2677_v29 = vsel %vm650_vm1, %v2667_v28, 0.0 }
 0xd21   : > { %2678 = vadd.xlane.f32.xlu0 %v2677_v29 }
 0xd9e   : > { %v2670_v35 = vpop.xlane.xlu1 %2669 }
 0xd9f   : > { %v2680_v13 = vmul.f32 0.03125, %v2670_v35 }
 0xda1   : > { %v2684_v9 = vadd.f32 1e-05, %v2680_v13 }
 0xda2   : > { %v2673_v36 = vpop.xlane.xlu0 %2672 }
 0xda3   : > { %3753 = vrsqrt.f32 %v2684_v9  ;;  %v2681_v17 = vmul.f32 0.03125, %v2673_v36 }
 0xda5   : > { %v2685_v37 = vadd.f32 1e-05, %v2681_v17 }
 0xda6   : > { %v2676_v38 = vpop.xlane.xlu0 %2675 }
 0xda7   : > { %3755 = vrsqrt.f32 %v2685_v37  ;;  %v2682_v59 = vmul.f32 0.03125, %v2676_v38 }
 0xda9   : > { %v2686_v39 = vadd.f32 1e-05, %v2682_v59 }
 0xdaa   : > { %v2679_v15 = vpop.xlane.xlu0 %2678 }
 0xdab   : > { %3757 = vrsqrt.f32 %v2686_v39  ;;  %v2683_v40 = vmul.f32 0.03125, %v2679_v15 }
 0xdad   : > { %v2687_v41 = vadd.f32 1e-05, %v2683_v40 }
 0xdaf   : > { %3759 = vrsqrt.f32 %v2687_v41 }
 0xdb0   : > { %v3754_v20 = vpop.eup %3753 }
 0xdb1   : > { %v2692_v45 = vmul.f32 %v3754_v20, %v2660_v7  ;;  %v3235_v7 = vld [vmem:[%s4756_s14 + $0xb8] sm:$0xff] }
 0xdb2   : > { %3641 = vmatprep.subr.mxu1 %v3235_v7 }
 0xdb3   : > { %v2702_v33 = vmul.f32 %v3216_v44, %v2692_v45  ;;  %3642 = vmatpush3.msra.mxu1 %v3235_v7 }
 0xdb4   : > { %v3756_v52 = vpop.eup %3755  ;;  %3643 = vmatprep.subr.mxu1 %v3234_v50 }
 0xdb5   : > { %v2693_v53 = vmul.f32 %v3756_v52, %v2661_v31  ;;  %v2712_v54 = vadd.f32 %v3217_v47, %v2702_v33  ;;  %3644 = vmatpush3.msra.mxu1 %v3234_v50  ;;  %v3231_v31 = vld [vmem:[%s4756_s14 + $0x98] sm:$0xff] }
 0xdb6   : > { %3645 = vmatprep.subr.mxu1 %v3233_v8 }
 0xdb7   : > { %3619 = vmatprep.mubr.msk.f32.mxu0 %vm650_vm1, %v2712_v54  ;;  %v2703_v55 = vmul.f32 %v3216_v44, %v2693_v53  ;;  %3646 = vmatpush3.msra.mxu1 %v3233_v8 }
 0xdb8   : > { %v3758_v56 = vpop.eup %3757  ;;  %3647 = vmatprep.subr.mxu1 %v3232_v10 }
 0xdb9   : > { %v2713_v5 = vadd.f32 %v3217_v47, %v2703_v55  ;;  %v2694_v42 = vmul.f32 %v3758_v56, %v2662_v21  ;;  %3648 = vmatpush3.msra.mxu1 %v3232_v10 }
 0xdba   : > { %3649 = vmatprep.subr.mxu1 %v3231_v31 }
 0xdbb   : > { %3620 = vmatmul.mubr.msk.f32.vlgmr.msra.gmra.mxu0 %vm650_vm1, %v2713_v5  ;;  %v2704_v57 = vmul.f32 %v3216_v44, %v2694_v42  ;;  %3650 = vmatpush3.msra.mxu1 %v3231_v31 }
 0xdbc   : > { %v3760_v16 = vpop.eup %3759  ;;  %3651 = vmatprep.subr.mxu1 %v3230_v11 }
 0xdbd   : > { %v2714_v58 = vadd.f32 %v3217_v47, %v2704_v57  ;;  %v2695_v60 = vmul.f32 %v3760_v16, %v2663_v26  ;;  %3652 = vmatpush3.msra.mxu1 %v3230_v11 }
 0xdbe   : > { %3653 = vmatprep.subr.mxu1 %v3229_v14 }
 0xdbf   : > { %3622 = vmatprep.mubr.msk.f32.mxu0 %vm650_vm1, %v2714_v58  ;;  %v2705_v61 = vmul.f32 %v3216_v44, %v2695_v60  ;;  %3654 = vmatpush3.msra.mxu1 %v3229_v14 }
 0xdc0   : > { %3655 = vmatprep.subr.mxu1 %v3228_v51 }
 0xdc1   : > { %v2715_v12 = vadd.f32 %v3217_v47, %v2705_v61  ;;  %3656 = vmatpush3.msra.mxu1 %v3228_v51 }
 0xdc3   : > { %3623 = vmatmul.mubr.msk.f32.gmra.mxu0 %vm650_vm1, %v2715_v12 }
 0xe7b   : > { %v3621_v21 = vpop.f32.mrf.mxu0 }
 0xe7c   : > { %v2813_v22 = vadd.f32 %v3621_v21, %v3223_v18 }
 0xe7d   : > { %v2807_v23 = vpop.f32.mrf.mxu0 }
 0xe7e   : > { %v2831_v24 = vmul.f32 %v2813_v22, %v2813_v22  ;;  %v2808_v25 = vadd.f32 %v3223_v18, %v2807_v23  ;;  %v2827_v55 = vmul.f32 0.5, %v2813_v22 }
 0xe80   : > { %v2835_v26 = vmul.f32 %v2831_v24, %v2813_v22  ;;  %v2830_v27 = vmul.f32 %v2808_v25, %v2808_v25  ;;  %v2826_v53 = vmul.f32 0.5, %v2808_v25 }
 0xe82   : > { %v2839_v28 = vmul.f32 0.044715, %v2835_v26  ;;  %v2834_v29 = vmul.f32 %v2830_v27, %v2808_v25 }
 0xe83   : > { %v3624_v30 = vpop.f32.mrf.mxu0 }
 0xe84   : > { %v2843_v32 = vadd.f32 %v2839_v28, %v2813_v22  ;;  %v2838_v34 = vmul.f32 0.044715, %v2834_v29  ;;  %v2823_v62 = vadd.f32 %v3624_v30, %v3223_v18 }
 0xe85   : > { %v2817_v35 = vpop.f32.mrf.mxu0 }
 0xe86   : > { %v2847_v13 = vmul.f32 0.7978846, %v2843_v32  ;;  %v2842_v9 = vadd.f32 %v2838_v34, %v2808_v25  ;;  %v2833_v36 = vmul.f32 %v2823_v62, %v2823_v62  ;;  %v2818_v17 = vadd.f32 %v3223_v18, %v2817_v35 }
 0xe87   : > { %v2829_v61 = vmul.f32 0.5, %v2823_v62 }
 0xe88   : > { %3761 = vtanh.f32 %v2847_v13  ;;  %v2846_v37 = vmul.f32 0.7978846, %v2842_v9  ;;  %v2837_v38 = vmul.f32 %v2833_v36, %v2823_v62  ;;  %v2832_v59 = vmul.f32 %v2818_v17, %v2818_v17 }
 0xe89   : > { %v2828_v58 = vmul.f32 0.5, %v2818_v17 }
 0xe8a   : > { %v2841_v39 = vmul.f32 0.044715, %v2837_v38  ;;  %v2836_v15 = vmul.f32 %v2832_v59, %v2818_v17  ;;  %3763 = vtanh.f32 %v2846_v37 }
 0xe8c   : > { %v2845_v40 = vadd.f32 %v2841_v39, %v2823_v62  ;;  %v2840_v41 = vmul.f32 0.044715, %v2836_v15 }
 0xe8e   : > { %v2849_v20 = vmul.f32 0.7978846, %v2845_v40  ;;  %v2844_v44 = vadd.f32 %v2840_v41, %v2818_v17 }
 0xe90   : > { %v2848_v45 = vmul.f32 0.7978846, %v2844_v44  ;;  %3765 = vtanh.f32 %v2849_v20 }
 0xe92   : > { %3767 = vtanh.f32 %v2848_v45 }
 0xe95   : > { %v3762_v47 = vpop.eup %3761 }
 0xe96   : > { %v2855_v52 = vadd.f32 1.0, %v3762_v47 }
 0xe97   : > { %v3764_v33 = vpop.eup %3763 }
 0xe98   : > { %v2854_v54 = vadd.f32 1.0, %v3764_v33  ;;  %v2859_v5 = vmul.f32 %v2855_v52, %v2827_v55 }
 0xe9a   : > { %v2858_v56 = vmul.f32 %v2854_v54, %v2826_v53  ;;  %v3777_v53 = vld [vmem:[%s4745_s3] ss:$0 sm:$0xff] }
 0xe9c   : > { %3657 = vmatprep.mubr.f32.mxu1 %v2858_v56  ;;  %v3778_v56 = vld [vmem:[%s4746_s4] ss:$0 sm:$0xff] }
 0xe9d   : > { %v3766_v42 = vpop.eup %3765  ;;  %3658 = vmatmul.mubr.f32.vlgmr.msra.gmra.mxu1 %v2859_v5 }
 0xe9e   : > { %v2857_v16 = vadd.f32 1.0, %v3766_v42 }
 0xe9f   : > { %v3768_v57 = vpop.eup %3767 }
 0xea0   : > { %v2856_v60 = vadd.f32 1.0, %v3768_v57  ;;  %v2861_v1 = vmul.f32 %v2857_v16, %v2829_v61 }
 0xea2   : > { %v2860_v12 = vmul.f32 %v2856_v60, %v2828_v58 }
 0xea4   : > { %3660 = vmatprep.mubr.f32.mxu1 %v2860_v12 }
 0xea5   : > { %3661 = vmatmul.mubr.f32.gmra.mxu1 %v2861_v1 }
 0xf5d   : > { %v3659_v2 = vpop.f32.mrf.mxu1 }
 0xf5e   : > { %v2965_v19 = vadd.f32 %v3659_v2, %v4566_v0 }
 0xf5f   : > { %v2945_v3 = vpop.f32.mrf.mxu1 }
 0xf60   : > { %v2964_v49 = vadd.f32 %v2945_v3, %v4561_v63  ;;  %v2977_v4 = vadd.f32 %v3245_v46, %v2965_v19 }
 0xf62   : > { %v2983_v6 = vsel %vm650_vm1, %v2977_v4, 0.0  ;;  %v2976_v7 = vadd.f32 %v3245_v46, %v2964_v49 }
 0xf63   : > { %2984 = vadd.xlane.f32.xlu0 %v2983_v6 }
 0xf64   : > { %v2980_v8 = vsel %vm650_vm1, %v2976_v7, 0.0 }
 0xf65   : > { %v3662_v50 = vpop.f32.mrf.mxu1 }
 0xf66   : > { %v2967_v31 = vadd.f32 %v3662_v50, %v4579_v43 }
 0xf67   : > { %2981 = vadd.xlane.f32.xlu0 %v2980_v8  ;;  %v2955_v10 = vpop.f32.mrf.mxu1 }
 0xf68   : > { %v2966_v11 = vadd.f32 %v2955_v10, %v4573_v48  ;;  %v2979_v51 = vadd.f32 %v3245_v46, %v2967_v31 }
 0xf6a   : > { %v2978_v14 = vadd.f32 %v3245_v46, %v2966_v11  ;;  %v2989_v63 = vsel %vm650_vm1, %v2979_v51, 0.0 }
 0xf6c   : > { %v2986_v0 = vsel %vm650_vm1, %v2978_v14, 0.0 }
 0xf6d   : > { %2987 = vadd.xlane.f32.xlu0 %v2986_v0 }
 0xf71   : > { %2990 = vadd.xlane.f32.xlu0 %v2989_v63 }
 0xfec   : > { %v2985_v18 = vpop.xlane.xlu0 %2984 }
 0xfed   : > { %v2993_v21 = vmul.f32 0.03125, %v2985_v18 }
 0xfef   : > { %v2997_v22 = vsub.f32 %v2977_v4, %v2993_v21 }
 0xff0   : > { %v2982_v23 = vpop.xlane.xlu0 %2981 }
 0xff1   : > { %v2992_v24 = vmul.f32 0.03125, %v2982_v23  ;;  %v3001_v25 = vmul.f32 %v2997_v22, %v2997_v22 }
 0xff3   : > { %v2996_v26 = vsub.f32 %v2976_v7, %v2992_v24  ;;  %v3007_v27 = vsel %vm650_vm1, %v3001_v25, 0.0 }
 0xff4   : > { %3008 = vadd.xlane.f32.xlu0 %v3007_v27 }
 0xff5   : > { %v3000_v43 = vmul.f32 %v2996_v26, %v2996_v26 }
 0xff6   : > { %v2988_v48 = vpop.xlane.xlu0 %2987 }
 0xff7   : > { %v2994_v28 = vmul.f32 0.03125, %v2988_v48  ;;  %v3004_v29 = vsel %vm650_vm1, %v3000_v43, 0.0 }
 0xff8   : > { %3005 = vadd.xlane.f32.xlu0 %v3004_v29 }
 0xff9   : > { %v2998_v30 = vsub.f32 %v2978_v14, %v2994_v28 }
 0xffa   : > { %v2991_v32 = vpop.xlane.xlu0 %2990 }
 0xffb   : > { %v2995_v34 = vmul.f32 0.03125, %v2991_v32  ;;  %v3002_v62 = vmul.f32 %v2998_v30, %v2998_v30 }
 0xffd   : > { %v2999_v35 = vsub.f32 %v2979_v51, %v2995_v34  ;;  %v3010_v13 = vsel %vm650_vm1, %v3002_v62, 0.0 }
 0xffe   : > { %3011 = vadd.xlane.f32.xlu1 %v3010_v13 }
 0xfff   : > { %v3003_v9 = vmul.f32 %v2999_v35, %v2999_v35 }
0x1001   : > { %v3013_v36 = vsel %vm650_vm1, %v3003_v9, 0.0 }
0x1002   : > { %3014 = vadd.xlane.f32.xlu0 %v3013_v36 }
0x107d   : > { %v3009_v17 = vpop.xlane.xlu0 %3008 }
0x107e   : > { %v3017_v37 = vmul.f32 0.03125, %v3009_v17 }
0x1080   : > { %v3021_v38 = vadd.f32 1e-05, %v3017_v37 }
0x1081   : > { %v3006_v59 = vpop.xlane.xlu0 %3005 }
0x1082   : > { %3769 = vrsqrt.f32 %v3021_v38  ;;  %v3016_v39 = vmul.f32 0.03125, %v3006_v59 }
0x1084   : > { %v3020_v15 = vadd.f32 1e-05, %v3016_v39 }
0x1086   : > { %3771 = vrsqrt.f32 %v3020_v15 }
0x1087   : > { %v3012_v40 = vpop.xlane.xlu1 %3011 }
0x1088   : > { %v3018_v41 = vmul.f32 0.03125, %v3012_v40 }
0x108a   : > { %v3022_v20 = vadd.f32 1e-05, %v3018_v41 }
0x108b   : > { %v3015_v44 = vpop.xlane.xlu0 %3014 }
0x108c   : > { %3773 = vrsqrt.f32 %v3022_v20  ;;  %v3019_v45 = vmul.f32 0.03125, %v3015_v44 }
0x108e   : > { %v3023_v47 = vadd.f32 1e-05, %v3019_v45 }
0x108f   : > { %v3770_v33 = vpop.eup %3769 }
0x1090   : > { %v3029_v52 = vmul.f32 %v3770_v33, %v2997_v22  ;;  %3775 = vrsqrt.f32 %v3023_v47 }
0x1092   : > { %v3033_v54 = vmul.f32 %v3777_v53, %v3029_v52 }
0x1093   : > { %v3772_v55 = vpop.eup %3771 }
0x1094   : > { %v3037_v5 = vadd.f32 %v3778_v56, %v3033_v54  ;;  %v3028_v42 = vmul.f32 %v3772_v55, %v2996_v26 }
0x1096   : > { %v3032_v57 = vmul.f32 %v3777_v53, %v3028_v42  ;;  %3041 = vst.msk [vmem:[%s514_s20 + $0x8] sm:$0xff] %vm650_vm1, %v3037_v5 }
0x1098   : > { %v3036_v16 = vadd.f32 %v3778_v56, %v3032_v57 }
0x1099   : > { %v3774_v58 = vpop.eup %3773 }
0x109a   : > { %v3030_v60 = vmul.f32 %v3774_v58, %v2998_v30  ;;  %3040 = vst.msk [vmem:[%s514_s20] sm:$0xff] %vm650_vm1, %v3036_v16 }
0x109c   : > { %v3034_v61 = vmul.f32 %v3777_v53, %v3030_v60 }
0x109d   : > { %v3776_v12 = vpop.eup %3775 }
0x109e   : > { %v3038_v1 = vadd.f32 %v3778_v56, %v3034_v61  ;;  %v3031_v2 = vmul.f32 %v3776_v12, %v2999_v35 }
0x10a0   : > { %v3035_v46 = vmul.f32 %v3777_v53, %v3031_v2  ;;  %3042 = vst.msk [vmem:[%s514_s20 + $0x10] sm:$0xff] %vm650_vm1, %v3038_v1 }
0x10a2   : > { %v3039_v19 = vadd.f32 %v3778_v56, %v3035_v46 }
0x10a4   : > { %3043 = vst.msk [vmem:[%s514_s20 + $0x18] sm:$0xff] %vm650_vm1, %v3039_v19 }
0x10a5   : > { %3792 = shalt.err (!%p3789_p3)
}
0x10a6   : > { %s3793_s21 = scalar_lea.hbm %s4695_s30, 512  ;;  %s3797_s26 = scalar_lea.hbm %s4758_s16, 1024 }
0x10a7   : > { %p3794_p4 = scmp.ne.s32.totalorder %s4695_s30, %s3793_s21  ;;  %p3798_p9 = scmp.lt.s32.totalorder %s4695_s30, %s4758_s16 }
0x10a8   : > { %p3799_p10 = scmp.lt.s32.totalorder %s3797_s26, %s3793_s21 }
0x10a9   : > { %p3795_p7 = pnand %p3794_p4, %p3970_p5 }
0x10aa   : > { %p3800_p11 = por %p3799_p10, %p3798_p9 }
0x10ab   : > { %p3796_p8 = pneg %p3795_p7 }
0x10ad   : > { %p3801_p12 = pnand %p3800_p11, %p3796_p8 }
0x10af   : > { %3804 = shalt.err (!%p3801_p12)
}
0x10b0   : > { %s3845_s25 = smov 128   ;;  %s3846_s27 = smov 8  }
0x10b1   : > { %3663 = dma.vmem_to_hbm [thread:$0]  (%p3970_p5), %s4697_s28, 512, %s4695_s30, %s4702_s24, %s3845_s25, %s3845_s25, %s3846_s27  }
0x10b2 PF: > { %s4775_s17 = sld [smem:[#allocation7_spill]] }
0x10b3   : > { %s4776_s18 = sld [smem:[#allocation5_spill]] }
0x10b8   : > { %p3669_p13 = scmp.ge.s32.totalorder %s4775_s17, 2 }
0x10b9   : > { %s3073_s20 = sand.u32 1, %s4776_s18  }
0x10ba   : > { %p3666_p0 = pnand %p3669_p13, %p3974_p6  ;;  %s3074_s21 = scalar_lea.sflag [#allocation3], %s3073_s20 }
0x10bc   : > { %p3667_p1 = pneg %p3666_p0 }
0x10be   : > { %3822 = dma.done.wait (%p3667_p1), %s3074_s21, 512  }
0x10bf   : > { %3824 = vsyncadd (%p3667_p1), %s3074_s21, 4294966784  ;;  %s4778_s24 = sld [smem:[#allocation8_spill]]  ;;  %s4781_s21 = smov %s3831_s22 }
0x10c0   : > { %s4779_s26 = sld [smem:[#allocation6_spill]] }
0x10c1   : > { %s4780_s23 = sld [smem:[#allocation9_spill]] }
0x10c5   : > { %p26_p2 = scmp.ge.s32.totalorder %s4778_s24, 4  }
0x10c6   : > { %s4782_s22 = smov %s4779_s26 }
0x10c7   :  { %28 = sbr.rel (!%p26_p2) target bundleno = 5 (0x5), region = 141 }
0x10cc   :  { %3079 = vsyncpa [#allocation3], 1 }
0x10cd   :  { %3081 = vsyncpa [#allocation3 + $0x1], 1 }

</bundles_post_ra>
